<compile_context>
chip_gen: v7x
topology: tpu7x:2x2x1
jax: 0.10.0
libtpu: 0.0.40
codegen_flags: <defaults>
</compile_context>

<pallas_src>
import numpy as np
import jax
import jax.numpy as jnp
from jax.experimental import pallas as pl
from jax.experimental.pallas import tpu as pltpu

C1, C2, C3 = 10, 6, 3          # conv output channels
HIDDEN = 16                    # fc1 / LSTM hidden size
KH1, KH2, KH3 = 5, 3, 2        # conv kernel heights (= widths)


def _vmem_spec():
    return pl.BlockSpec(memory_space=pltpu.MemorySpace.VMEM)


# ----------------------------- kernel --------------------------------------

def _mm(a2d, w2d):
    """Single 2-D matmul on the MXU (batch already flattened into M)."""
    return jnp.dot(a2d, w2d, preferred_element_type=jnp.float32)


def _row_unfold(a, kh):
    """(B, H, L) -> (B, H-kh+1, kh*L): concatenate the kh shifted row windows
    along the lane axis so the whole conv becomes ONE matmul (K = kh*L)."""
    ho = a.shape[1] - kh + 1
    # TODO(synk): the shifted slices sit at non-multiple-of-8 sublane offsets;
    # if vld/vst slots ever become the bottleneck, switch to pltpu.roll.
    return jnp.concatenate([a[:, i:i + ho, :] for i in range(kh)], axis=-1)


def _conv_pool_relu(a, we_ref, wo_ref, b_ref, kh):
    """valid conv (stride 1) + 2x2 max-pool + relu.  The width half of the
    pool is folded into the pre-banded even/odd column weights; the height
    half is a row-pair max (no MXU work).  Pool-before-(bias+relu) is exact."""
    bsz, h_in, l_in = a.shape
    ho = h_in - kh + 1
    hp = ho // 2
    u = _row_unfold(a, kh).reshape(bsz * ho, kh * l_in)       # (B*Ho, kh*L)
    ze = _mm(u, we_ref[...])                                  # even out cols
    zo = _mm(u, wo_ref[...])                                  # odd  out cols
    zw = jnp.maximum(ze, zo)                                  # pooled in W
    lw = zw.shape[-1]
    zp = jnp.max(zw.reshape(bsz * hp, 2, lw), axis=1)         # pooled in H
    return jnp.maximum(zp.reshape(bsz, hp, lw) + b_ref[...], 0.0)


def _conv_relu(a, w_ref, b_ref, kh):
    bsz, h_in, l_in = a.shape
    ho = h_in - kh + 1
    u = _row_unfold(a, kh).reshape(bsz * ho, kh * l_in)
    z = _mm(u, w_ref[...])
    return jnp.maximum(z.reshape(bsz, ho, z.shape[-1]) + b_ref[...], 0.0)


def _fused_dqn_kernel(x_ref,
                      c1e_ref, c1o_ref, b1_ref,
                      c2e_ref, c2o_ref, b2_ref,
                      c3_ref, b3_ref,
                      fc1w_ref, fc1b_ref, lstmw_ref, lstmb_ref,
                      fc2w_ref, fc2b_ref, outw_ref, outb_ref,
                      o_ref):
    x = x_ref[...]                                            # (B, H, W), Cin=1
    a1 = _conv_pool_relu(x, c1e_ref, c1o_ref, b1_ref, KH1)    # (B, 8, 8*C1)
    a2 = _conv_pool_relu(a1, c2e_ref, c2o_ref, b2_ref, KH2)   # (B, 3, 3*C2)
    a3 = _conv_relu(a2, c3_ref, b3_ref, KH3)                  # (B, Ho3, Wo3*C3)

    # fc1 + relu: lane-concat the Ho3 rows -> one matmul; the PyTorch NCHW
    # flatten order is baked into fc1w at init.
    flat = jnp.concatenate([a3[:, h, :] for h in range(a3.shape[1])], axis=-1)
    h1 = jnp.maximum(_mm(flat, fc1w_ref[...]) + fc1b_ref[...], 0.0)   # (B, 16)

    # Single-step LSTM with zero (h0, c0): the W_hh term vanishes and the
    # forget gate multiplies c0 = 0, so only (i, g, o) gate columns are kept.
    hid = HIDDEN
    gates = _mm(h1, lstmw_ref[...]) + lstmb_ref[...]          # (B, 3*hid)
    i_g = jax.nn.sigmoid(gates[:, 0:hid])
    g_g = jnp.tanh(gates[:, hid:2 * hid])
    o_g = jax.nn.sigmoid(gates[:, 2 * hid:3 * hid])
    h_lstm = o_g * jnp.tanh(i_g * g_g)                        # c1 = i*g

    h2 = jnp.maximum(_mm(h_lstm, fc2w_ref[...]) + fc2b_ref[...], 0.0)
    o_ref[...] = _mm(h2, outw_ref[...]) + outb_ref[...]       # (B, A)


# ----------------------------- wrapper --------------------------------------

def health_dqn_forward(x, kp):
    """x: (B, H, W) float32 -> (B, n_actions) float32."""
    B = x.shape[0]
    A = kp['out_b'].shape[-1]
    args = (x,
            kp['c1_even'], kp['c1_odd'], kp['b1'],
            kp['c2_even'], kp['c2_odd'], kp['b2'],
            kp['c3'], kp['b3'],
            kp['fc1_w'], kp['fc1_b'], kp['lstm_w'], kp['lstm_b'],
            kp['fc2_w'], kp['fc2_b'], kp['out_w'], kp['out_b'])
    return pl.pallas_call(
        _fused_dqn_kernel,
        out_shape=jax.ShapeDtypeStruct((B, A), jnp.float32),
        in_specs=[_vmem_spec()] * len(args),
        out_specs=_vmem_spec(),
        compiler_params=pltpu.CompilerParams(vmem_limit_bytes=32 * 1024 * 1024),
    )(*args)


# ------------------------ init-time weight preparation ----------------------

def _conv_stack_dims(img_shape):
    h, w = img_shape
    ho1, wo1 = h - 4, w - 4          # conv1 5x5
    hp1, wp1 = ho1 // 2, wo1 // 2    # pool 2x2 (floor mode)
    ho2, wo2 = hp1 - 2, wp1 - 2      # conv2 3x3
    hp2, wp2 = ho2 // 2, wo2 // 2    # pool 2x2 (floor mode)
    ho3, wo3 = hp2 - 1, wp2 - 1      # conv3 2x2
    return ho1, wo1, hp1, wp1, ho2, wo2, hp2, wp2, ho3, wo3


def _banded_conv_mats(w, w_in, pooled):
    """Single (kh*W_in*Cin, Wp*Cout) matmul weight for a valid conv on the
    (B, H, W*Cin) layout, contracting over the kh lane-concatenated row shifts.
    If `pooled`, returns (even, odd) output-column variants that fold the
    width half of the following 2x2 max-pool (last odd column dropped, as in
    PyTorch floor-mode MaxPool2d)."""
    cout, cin, kh, kw = w.shape
    wo = w_in - kw + 1
    wp = wo // 2 if pooled else wo
    parities = (0, 1) if pooled else (None,)
    mats = []
    for p in parities:
        m = np.zeros((kh, w_in * cin, wp * cout), np.float32)
        for i in range(kh):
            for j in range(kw):
                blk = w[:, :, i, j].T                       # (cin, cout)
                for c in range(wp):
                    col = 2 * c + p if pooled else c        # source column
                    r0 = (col + j) * cin
                    m[i, r0:r0 + cin, c * cout:(c + 1) * cout] = blk
        mats.append(m.reshape(kh * w_in * cin, wp * cout))
    return mats


def init_torch_params(key, img_shape, n_actions):
    """Random params in native PyTorch layouts (uniform +-1/sqrt(fan_in))."""
    ho3, wo3 = _conv_stack_dims(img_shape)[-2:]
    fc_feats = C3 * ho3 * wo3
    ks = jax.random.split(key, 16)

    def unif(k, shape, fan_in):
        b = 1.0 / np.sqrt(fan_in)
        return np.asarray(jax.random.uniform(k, shape, jnp.float32, -b, b))

    return {
        'conv1_w': unif(ks[0], (C1, 1, 5, 5), 25),
        'conv1_b': unif(ks[1], (C1,), 25),
        'conv2_w': unif(ks[2], (C2, C1, 3, 3), C1 * 9),
        'conv2_b': unif(ks[3], (C2,), C1 * 9),
        'conv3_w': unif(ks[4], (C3, C2, 2, 2), C2 * 4),
        'conv3_b': unif(ks[5], (C3,), C2 * 4),
        'fc1_w': unif(ks[6], (HIDDEN, fc_feats), fc_feats),
        'fc1_b': unif(ks[7], (HIDDEN,), fc_feats),
        # LSTM(16,16): W_hh is unused (seq_len 1, zero initial state).
        'lstm_w_ih': unif(ks[8], (4 * HIDDEN, HIDDEN), HIDDEN),
        'lstm_b_ih': unif(ks[9], (4 * HIDDEN,), HIDDEN),
        'lstm_b_hh': unif(ks[10], (4 * HIDDEN,), HIDDEN),
        'fc2_w': unif(ks[11], (10, HIDDEN), HIDDEN),
        'fc2_b': unif(ks[12], (10,), HIDDEN),
        'out_w': unif(ks[13], (n_actions, 10), 10),
        'out_b': unif(ks[14], (n_actions,), 10),
    }


def prepare_kernel_params(tp, img_shape):
    """Fold every layout transform into the weights once, at init time."""
    _, w = img_shape
    ho1, _, _, wp1, ho2, _, _, wp2, ho3, wo3 = _conv_stack_dims(img_shape)
    # The fused height pool (row-pair max) assumes even conv output heights;
    # this holds for the 20x20 input used by this model.
    assert ho1 % 2 == 0 and ho2 % 2 == 0, "fused H-pool needs even conv heights"

    c1e, c1o = _banded_conv_mats(tp['conv1_w'], w, pooled=True)
    c2e, c2o = _banded_conv_mats(tp['conv2_w'], wp1, pooled=True)
    (c3,) = _banded_conv_mats(tp['conv3_w'], wp2, pooled=False)

    # fc1: permute columns so the kernel's lane-concat of conv3 rows
    # (index = h*Wo3*C3 + w*C3 + c) reproduces the PyTorch NCHW flatten
    # (index = c*Ho3*Wo3 + h*Wo3 + w); single stacked (Ho3*Wo3*C3, 16) matrix.
    fc1 = np.zeros((ho3 * wo3 * C3, HIDDEN), np.float32)
    for hh in range(ho3):
        for ww in range(wo3):
            for cc in range(C3):
                fc1[hh * wo3 * C3 + ww * C3 + cc, :] = \
                    tp['fc1_w'][:, cc * ho3 * wo3 + hh * wo3 + ww]

    # LSTM: keep only (i, g, o) gate columns; gate order in torch is i,f,g,o.
    keep = np.concatenate([np.arange(0, HIDDEN),
                           np.arange(2 * HIDDEN, 3 * HIDDEN),
                           np.arange(3 * HIDDEN, 4 * HIDDEN)])
    bsum = tp['lstm_b_ih'] + tp['lstm_b_hh']

    kp = {
        'c1_even': c1e, 'c1_odd': c1o,
        'b1': np.tile(tp['conv1_b'], wp1)[None, :],
        'c2_even': c2e, 'c2_odd': c2o,
        'b2': np.tile(tp['conv2_b'], wp2)[None, :],
        'c3': c3,
        'b3': np.tile(tp['conv3_b'], wo3)[None, :],
        'fc1_w': fc1, 'fc1_b': tp['fc1_b'][None, :],
        'lstm_w': np.ascontiguousarray(tp['lstm_w_ih'][keep].T),
        'lstm_b': bsum[keep][None, :],
        'fc2_w': np.ascontiguousarray(tp['fc2_w'].T), 'fc2_b': tp['fc2_b'][None, :],
        'out_w': np.ascontiguousarray(tp['out_w'].T), 'out_b': tp['out_b'][None, :],
    }
    return jax.tree_util.tree_map(jnp.asarray, kp)


# ----------------------------- main ------------------------------------------

if __name__ == '__main__':
    IMG_SHAPE = (20, 20)          # conv stack -> (3, 2, 2) -> fc_feats = 12
    ACTIONS = [0, 1, 2, 3]
    BATCH = 2

    key = jax.random.PRNGKey(0)
    pkey, xkey = jax.random.split(key)
    torch_params = init_torch_params(pkey, IMG_SHAPE, len(ACTIONS))
    kparams = prepare_kernel_params(torch_params, IMG_SHAPE)
    x = jax.random.uniform(xkey, (BATCH,) + IMG_SHAPE, jnp.float32)

    fwd = jax.jit(health_dqn_forward)
    out = jax.block_until_ready(fwd(x, kparams))

    assert out.shape == (BATCH, len(ACTIONS))
    assert out.dtype == jnp.float32
    assert bool(jnp.all(jnp.isfinite(out)))
    print("KERNEL_OK")
</pallas_src>

<mosaic_0001>
module attributes {stable_mosaic.version = 11 : i64} {
  func.func @_fused_dqn_kernel(%arg0: memref<2x20x20xf32, #tpu.memory_space<vmem>>, %arg1: memref<100x80xf32, #tpu.memory_space<vmem>>, %arg2: memref<100x80xf32, #tpu.memory_space<vmem>>, %arg3: memref<1x80xf32, #tpu.memory_space<vmem>>, %arg4: memref<240x18xf32, #tpu.memory_space<vmem>>, %arg5: memref<240x18xf32, #tpu.memory_space<vmem>>, %arg6: memref<1x18xf32, #tpu.memory_space<vmem>>, %arg7: memref<36x6xf32, #tpu.memory_space<vmem>>, %arg8: memref<1x6xf32, #tpu.memory_space<vmem>>, %arg9: memref<12x16xf32, #tpu.memory_space<vmem>>, %arg10: memref<1x16xf32, #tpu.memory_space<vmem>>, %arg11: memref<16x48xf32, #tpu.memory_space<vmem>>, %arg12: memref<1x48xf32, #tpu.memory_space<vmem>>, %arg13: memref<16x10xf32, #tpu.memory_space<vmem>>, %arg14: memref<1x10xf32, #tpu.memory_space<vmem>>, %arg15: memref<10x4xf32, #tpu.memory_space<vmem>>, %arg16: memref<1x4xf32, #tpu.memory_space<vmem>>, %arg17: memref<2x4xf32, #tpu.memory_space<vmem>>) attributes {dimension_semantics = [], scalar_prefetch = 0 : i64, scratch_operands = 0 : i64, tpu.core_type = #tpu.core_type<tc>} {
    %c0 = arith.constant 0 : index
    %c0_0 = arith.constant 0 : index
    %c0_1 = arith.constant 0 : index
    %0 = vector.load %arg0[%c0, %c0_0, %c0_1] : memref<2x20x20xf32, #tpu.memory_space<vmem>>, vector<2x20x20xf32>
    %1 = vector.extract_strided_slice %0 {offsets = [0, 0, 0], sizes = [2, 16, 20], strides = [1, 1, 1]} : vector<2x20x20xf32> to vector<2x16x20xf32>
    %2 = vector.extract_strided_slice %0 {offsets = [0, 1, 0], sizes = [2, 16, 20], strides = [1, 1, 1]} : vector<2x20x20xf32> to vector<2x16x20xf32>
    %3 = vector.extract_strided_slice %0 {offsets = [0, 2, 0], sizes = [2, 16, 20], strides = [1, 1, 1]} : vector<2x20x20xf32> to vector<2x16x20xf32>
    %4 = vector.extract_strided_slice %0 {offsets = [0, 3, 0], sizes = [2, 16, 20], strides = [1, 1, 1]} : vector<2x20x20xf32> to vector<2x16x20xf32>
    %5 = vector.extract_strided_slice %0 {offsets = [0, 4, 0], sizes = [2, 16, 20], strides = [1, 1, 1]} : vector<2x20x20xf32> to vector<2x16x20xf32>
    %6 = tpu.concatenate %1, %2, %3, %4, %5 in 2 : vector<2x16x20xf32>, vector<2x16x20xf32>, vector<2x16x20xf32>, vector<2x16x20xf32>, vector<2x16x20xf32> -> vector<2x16x100xf32>
    %7 = vector.shape_cast %6 : vector<2x16x100xf32> to vector<32x100xf32>
    %c0_2 = arith.constant 0 : index
    %c0_3 = arith.constant 0 : index
    %8 = vector.load %arg1[%c0_2, %c0_3] : memref<100x80xf32, #tpu.memory_space<vmem>>, vector<100x80xf32>
    %cst = arith.constant dense<0.000000e+00> : vector<32x80xf32>
    %9 = tpu.matmul %7, %8, %cst {dimension_numbers = #tpu.dot_dimension_numbers<[1], [0], [0], [1], [0, 0, 1, 1], [], []>} : vector<32x100xf32>, vector<100x80xf32>, vector<32x80xf32> -> vector<32x80xf32>
    %c0_4 = arith.constant 0 : index
    %c0_5 = arith.constant 0 : index
    %10 = vector.load %arg2[%c0_4, %c0_5] : memref<100x80xf32, #tpu.memory_space<vmem>>, vector<100x80xf32>
    %cst_6 = arith.constant dense<0.000000e+00> : vector<32x80xf32>
    %11 = tpu.matmul %7, %10, %cst_6 {dimension_numbers = #tpu.dot_dimension_numbers<[1], [0], [0], [1], [0, 0, 1, 1], [], []>} : vector<32x100xf32>, vector<100x80xf32>, vector<32x80xf32> -> vector<32x80xf32>
    %12 = arith.maximumf %9, %11 : vector<32x80xf32>
    %13 = vector.shape_cast %12 : vector<32x80xf32> to vector<16x2x80xf32>
    %cst_7 = arith.constant dense<0xFF800000> : vector<16x80xf32>
    %14 = vector.multi_reduction <maximumf>, %13, %cst_7 [1] : vector<16x2x80xf32> to vector<16x80xf32>
    %15 = vector.shape_cast %14 : vector<16x80xf32> to vector<2x8x80xf32>
    %c0_8 = arith.constant 0 : index
    %c0_9 = arith.constant 0 : index
    %16 = vector.load %arg3[%c0_8, %c0_9] : memref<1x80xf32, #tpu.memory_space<vmem>>, vector<1x80xf32>
    %17 = vector.shape_cast %16 : vector<1x80xf32> to vector<1x1x80xf32>
    %18 = vector.broadcast %17 : vector<1x1x80xf32> to vector<2x8x80xf32>
    %19 = arith.addf %15, %18 : vector<2x8x80xf32>
    %cst_10 = arith.constant 0.000000e+00 : f32
    %20 = vector.broadcast %cst_10 : f32 to vector<2x8x80xf32>
    %21 = arith.maximumf %19, %20 : vector<2x8x80xf32>
    %22 = vector.extract_strided_slice %21 {offsets = [0, 0, 0], sizes = [2, 6, 80], strides = [1, 1, 1]} : vector<2x8x80xf32> to vector<2x6x80xf32>
    %23 = vector.extract_strided_slice %21 {offsets = [0, 1, 0], sizes = [2, 6, 80], strides = [1, 1, 1]} : vector<2x8x80xf32> to vector<2x6x80xf32>
    %24 = vector.extract_strided_slice %21 {offsets = [0, 2, 0], sizes = [2, 6, 80], strides = [1, 1, 1]} : vector<2x8x80xf32> to vector<2x6x80xf32>
    %25 = tpu.concatenate %22, %23, %24 in 2 : vector<2x6x80xf32>, vector<2x6x80xf32>, vector<2x6x80xf32> -> vector<2x6x240xf32>
    %26 = vector.shape_cast %25 : vector<2x6x240xf32> to vector<12x240xf32>
    %c0_11 = arith.constant 0 : index
    %c0_12 = arith.constant 0 : index
    %27 = vector.load %arg4[%c0_11, %c0_12] : memref<240x18xf32, #tpu.memory_space<vmem>>, vector<240x18xf32>
    %cst_13 = arith.constant dense<0.000000e+00> : vector<12x18xf32>
    %28 = tpu.matmul %26, %27, %cst_13 {dimension_numbers = #tpu.dot_dimension_numbers<[1], [0], [0], [1], [0, 0, 1, 1], [], []>} : vector<12x240xf32>, vector<240x18xf32>, vector<12x18xf32> -> vector<12x18xf32>
    %c0_14 = arith.constant 0 : index
    %c0_15 = arith.constant 0 : index
    %29 = vector.load %arg5[%c0_14, %c0_15] : memref<240x18xf32, #tpu.memory_space<vmem>>, vector<240x18xf32>
    %cst_16 = arith.constant dense<0.000000e+00> : vector<12x18xf32>
    %30 = tpu.matmul %26, %29, %cst_16 {dimension_numbers = #tpu.dot_dimension_numbers<[1], [0], [0], [1], [0, 0, 1, 1], [], []>} : vector<12x240xf32>, vector<240x18xf32>, vector<12x18xf32> -> vector<12x18xf32>
    %31 = arith.maximumf %28, %30 : vector<12x18xf32>
    %32 = vector.shape_cast %31 : vector<12x18xf32> to vector<6x2x18xf32>
    %cst_17 = arith.constant dense<0xFF800000> : vector<6x18xf32>
    %33 = vector.multi_reduction <maximumf>, %32, %cst_17 [1] : vector<6x2x18xf32> to vector<6x18xf32>
    %34 = vector.shape_cast %33 : vector<6x18xf32> to vector<2x3x18xf32>
    %c0_18 = arith.constant 0 : index
    %c0_19 = arith.constant 0 : index
    %35 = vector.load %arg6[%c0_18, %c0_19] : memref<1x18xf32, #tpu.memory_space<vmem>>, vector<1x18xf32>
    %36 = vector.shape_cast %35 : vector<1x18xf32> to vector<1x1x18xf32>
    %37 = vector.broadcast %36 : vector<1x1x18xf32> to vector<2x3x18xf32>
    %38 = arith.addf %34, %37 : vector<2x3x18xf32>
    %cst_20 = arith.constant 0.000000e+00 : f32
    %39 = vector.broadcast %cst_20 : f32 to vector<2x3x18xf32>
    %40 = arith.maximumf %38, %39 : vector<2x3x18xf32>
    %41 = vector.extract_strided_slice %40 {offsets = [0, 0, 0], sizes = [2, 2, 18], strides = [1, 1, 1]} : vector<2x3x18xf32> to vector<2x2x18xf32>
    %42 = vector.extract_strided_slice %40 {offsets = [0, 1, 0], sizes = [2, 2, 18], strides = [1, 1, 1]} : vector<2x3x18xf32> to vector<2x2x18xf32>
    %43 = tpu.concatenate %41, %42 in 2 : vector<2x2x18xf32>, vector<2x2x18xf32> -> vector<2x2x36xf32>
    %44 = vector.shape_cast %43 : vector<2x2x36xf32> to vector<4x36xf32>
    %c0_21 = arith.constant 0 : index
    %c0_22 = arith.constant 0 : index
    %45 = vector.load %arg7[%c0_21, %c0_22] : memref<36x6xf32, #tpu.memory_space<vmem>>, vector<36x6xf32>
    %cst_23 = arith.constant dense<0.000000e+00> : vector<4x6xf32>
    %46 = tpu.matmul %44, %45, %cst_23 {dimension_numbers = #tpu.dot_dimension_numbers<[1], [0], [0], [1], [0, 0, 1, 1], [], []>} : vector<4x36xf32>, vector<36x6xf32>, vector<4x6xf32> -> vector<4x6xf32>
    %47 = vector.shape_cast %46 : vector<4x6xf32> to vector<2x2x6xf32>
    %c0_24 = arith.constant 0 : index
    %c0_25 = arith.constant 0 : index
    %48 = vector.load %arg8[%c0_24, %c0_25] : memref<1x6xf32, #tpu.memory_space<vmem>>, vector<1x6xf32>
    %49 = vector.shape_cast %48 : vector<1x6xf32> to vector<1x1x6xf32>
    %50 = vector.broadcast %49 : vector<1x1x6xf32> to vector<2x2x6xf32>
    %51 = arith.addf %47, %50 : vector<2x2x6xf32>
    %cst_26 = arith.constant 0.000000e+00 : f32
    %52 = vector.broadcast %cst_26 : f32 to vector<2x2x6xf32>
    %53 = arith.maximumf %51, %52 : vector<2x2x6xf32>
    %54 = vector.extract_strided_slice %53 {offsets = [0, 0, 0], sizes = [2, 1, 6], strides = [1, 1, 1]} : vector<2x2x6xf32> to vector<2x1x6xf32>
    %55 = vector.shape_cast %54 : vector<2x1x6xf32> to vector<2x6xf32>
    %56 = vector.extract_strided_slice %53 {offsets = [0, 1, 0], sizes = [2, 1, 6], strides = [1, 1, 1]} : vector<2x2x6xf32> to vector<2x1x6xf32>
    %57 = vector.shape_cast %56 : vector<2x1x6xf32> to vector<2x6xf32>
    %58 = tpu.concatenate %55, %57 in 1 : vector<2x6xf32>, vector<2x6xf32> -> vector<2x12xf32>
    %c0_27 = arith.constant 0 : index
    %c0_28 = arith.constant 0 : index
    %59 = vector.load %arg9[%c0_27, %c0_28] : memref<12x16xf32, #tpu.memory_space<vmem>>, vector<12x16xf32>
    %cst_29 = arith.constant dense<0.000000e+00> : vector<2x16xf32>
    %60 = tpu.matmul %58, %59, %cst_29 {dimension_numbers = #tpu.dot_dimension_numbers<[1], [0], [0], [1], [0, 0, 1, 1], [], []>} : vector<2x12xf32>, vector<12x16xf32>, vector<2x16xf32> -> vector<2x16xf32>
    %c0_30 = arith.constant 0 : index
    %c0_31 = arith.constant 0 : index
    %61 = vector.load %arg10[%c0_30, %c0_31] : memref<1x16xf32, #tpu.memory_space<vmem>>, vector<1x16xf32>
    %62 = vector.broadcast %61 : vector<1x16xf32> to vector<2x16xf32>
    %63 = arith.addf %60, %62 : vector<2x16xf32>
    %cst_32 = arith.constant 0.000000e+00 : f32
    %64 = vector.broadcast %cst_32 : f32 to vector<2x16xf32>
    %65 = arith.maximumf %63, %64 : vector<2x16xf32>
    %c0_33 = arith.constant 0 : index
    %c0_34 = arith.constant 0 : index
    %66 = vector.load %arg11[%c0_33, %c0_34] : memref<16x48xf32, #tpu.memory_space<vmem>>, vector<16x48xf32>
    %cst_35 = arith.constant dense<0.000000e+00> : vector<2x48xf32>
    %67 = tpu.matmul %65, %66, %cst_35 {dimension_numbers = #tpu.dot_dimension_numbers<[1], [0], [0], [1], [0, 0, 1, 1], [], []>} : vector<2x16xf32>, vector<16x48xf32>, vector<2x48xf32> -> vector<2x48xf32>
    %c0_36 = arith.constant 0 : index
    %c0_37 = arith.constant 0 : index
    %68 = vector.load %arg12[%c0_36, %c0_37] : memref<1x48xf32, #tpu.memory_space<vmem>>, vector<1x48xf32>
    %69 = vector.broadcast %68 : vector<1x48xf32> to vector<2x48xf32>
    %70 = arith.addf %67, %69 : vector<2x48xf32>
    %71 = vector.extract_strided_slice %70 {offsets = [0, 0], sizes = [2, 16], strides = [1, 1]} : vector<2x48xf32> to vector<2x16xf32>
    %72 = arith.negf %71 : vector<2x16xf32>
    %73 = math.exp %72 : vector<2x16xf32>
    %cst_38 = arith.constant 1.000000e+00 : f32
    %74 = vector.broadcast %cst_38 : f32 to vector<2x16xf32>
    %75 = arith.addf %74, %73 : vector<2x16xf32>
    %76 = arith.divf %74, %75 : vector<2x16xf32>
    %77 = vector.extract_strided_slice %70 {offsets = [0, 16], sizes = [2, 16], strides = [1, 1]} : vector<2x48xf32> to vector<2x16xf32>
    %78 = math.tanh %77 : vector<2x16xf32>
    %79 = vector.extract_strided_slice %70 {offsets = [0, 32], sizes = [2, 16], strides = [1, 1]} : vector<2x48xf32> to vector<2x16xf32>
    %80 = arith.negf %79 : vector<2x16xf32>
    %81 = math.exp %80 : vector<2x16xf32>
    %cst_39 = arith.constant 1.000000e+00 : f32
    %82 = vector.broadcast %cst_39 : f32 to vector<2x16xf32>
    %83 = arith.addf %82, %81 : vector<2x16xf32>
    %84 = arith.divf %82, %83 : vector<2x16xf32>
    %85 = arith.mulf %76, %78 : vector<2x16xf32>
    %86 = math.tanh %85 : vector<2x16xf32>
    %87 = arith.mulf %84, %86 : vector<2x16xf32>
    %c0_40 = arith.constant 0 : index
    %c0_41 = arith.constant 0 : index
    %88 = vector.load %arg13[%c0_40, %c0_41] : memref<16x10xf32, #tpu.memory_space<vmem>>, vector<16x10xf32>
    %cst_42 = arith.constant dense<0.000000e+00> : vector<2x10xf32>
    %89 = tpu.matmul %87, %88, %cst_42 {dimension_numbers = #tpu.dot_dimension_numbers<[1], [0], [0], [1], [0, 0, 1, 1], [], []>} : vector<2x16xf32>, vector<16x10xf32>, vector<2x10xf32> -> vector<2x10xf32>
    %c0_43 = arith.constant 0 : index
    %c0_44 = arith.constant 0 : index
    %90 = vector.load %arg14[%c0_43, %c0_44] : memref<1x10xf32, #tpu.memory_space<vmem>>, vector<1x10xf32>
    %91 = vector.broadcast %90 : vector<1x10xf32> to vector<2x10xf32>
    %92 = arith.addf %89, %91 : vector<2x10xf32>
    %cst_45 = arith.constant 0.000000e+00 : f32
    %93 = vector.broadcast %cst_45 : f32 to vector<2x10xf32>
    %94 = arith.maximumf %92, %93 : vector<2x10xf32>
    %c0_46 = arith.constant 0 : index
    %c0_47 = arith.constant 0 : index
    %95 = vector.load %arg15[%c0_46, %c0_47] : memref<10x4xf32, #tpu.memory_space<vmem>>, vector<10x4xf32>
    %cst_48 = arith.constant dense<0.000000e+00> : vector<2x4xf32>
    %96 = tpu.matmul %94, %95, %cst_48 {dimension_numbers = #tpu.dot_dimension_numbers<[1], [0], [0], [1], [0, 0, 1, 1], [], []>} : vector<2x10xf32>, vector<10x4xf32>, vector<2x4xf32> -> vector<2x4xf32>
    %c0_49 = arith.constant 0 : index
    %c0_50 = arith.constant 0 : index
    %97 = vector.load %arg16[%c0_49, %c0_50] : memref<1x4xf32, #tpu.memory_space<vmem>>, vector<1x4xf32>
    %98 = vector.broadcast %97 : vector<1x4xf32> to vector<2x4xf32>
    %99 = arith.addf %96, %98 : vector<2x4xf32>
    %c0_51 = arith.constant 0 : index
    %c0_52 = arith.constant 0 : index
    %100 = vector.load %arg17[%c0_51, %c0_52] : memref<2x4xf32, #tpu.memory_space<vmem>>, vector<2x4xf32>
    tpu.vector_store %arg17[%c0_51, %c0_52], %99 {strides = array<i32>} : memref<2x4xf32, #tpu.memory_space<vmem>>, vector<2x4xf32>,
    return
  }
}

</mosaic_0001>

<bundles_post_ra>
// kernel: health_dqn_forward.1
= control target key start
LH: loop header
LB: loop body
LE: loop exit
PB: predicated region body
PF: predicated region fallthrough
CT: control target
= control target key end

     0   :  { %s2845_s0 = inlined_call_operand.vmem [shape: f32[2,20,20], index: 0, kind: input, shape index: {}]   ;;  %s2846_s1 = inlined_call_operand.vmem [shape: f32[100,80], index: 1, kind: input, shape index: {}]   ;;  %s2847_s2 = inlined_call_operand.vmem [shape: f32[100,80], index: 2, kind: input, shape index: {}]   ;;  %s2848_s3 = inlined_call_operand.vmem [shape: f32[1,80], index: 3, kind: input, shape index: {}]   ;;  %s2849_s4 = inlined_call_operand.vmem [shape: f32[240,18], index: 4, kind: input, shape index: {}]   ;;  %s2850_s5 = inlined_call_operand.vmem [shape: f32[240,18], index: 5, kind: input, shape index: {}]   ;;  %s2851_s6 = inlined_call_operand.vmem [shape: f32[1,18], index: 6, kind: input, shape index: {}]   ;;  %s2852_s7 = inlined_call_operand.vmem [shape: f32[36,6], index: 7, kind: input, shape index: {}]   ;;  %s2853_s8 = inlined_call_operand.vmem [shape: f32[1,6], index: 8, kind: input, shape index: {}]   ;;  %s2854_s9 = inlined_call_operand.vmem [shape: f32[12,16], index: 9, kind: input, shape index: {}]   ;;  %s2855_s10 = inlined_call_operand.vmem [shape: f32[1,16], index: 10, kind: input, shape index: {}]   ;;  %s2856_s11 = inlined_call_operand.vmem [shape: f32[16,48], index: 11, kind: input, shape index: {}]   ;;  %s2857_s12 = inlined_call_operand.vmem [shape: f32[1,48], index: 12, kind: input, shape index: {}]   ;;  %s2858_s13 = inlined_call_operand.vmem [shape: f32[16,10], index: 13, kind: input, shape index: {}]   ;;  %s2859_s14 = inlined_call_operand.vmem [shape: f32[1,10], index: 14, kind: input, shape index: {}]   ;;  %s2860_s15 = inlined_call_operand.vmem [shape: f32[10,4], index: 15, kind: input, shape index: {}]   ;;  %s2861_s16 = inlined_call_operand.vmem [shape: f32[1,4], index: 16, kind: input, shape index: {}]   ;;  %s2862_s17 = inlined_call_operand.hbm [shape: f32[2,4], index: 17, kind: output, shape index: {}]  }
   0x1   :  { %2867 = sst [smem:[#allocation5_spill]] %s2845_s0 }
   0x2   :  { %2868 = sst [smem:[#allocation6_spill]] %s2846_s1 }
   0x3   :  { %s2869_s26 = sld [smem:[#allocation5_spill]]  ;;  %vm92_vm0 = vcmask 1045504   ;;  %vm69_vm1 = vcmask 1046528   ;;  %s2051_s30 = smov 40   ;;  %vm115_vm2 = vcmask 1044480   ;;  %v295_v20 = vld [vmem:[%s2847_s2] sm:$0xff] }
   0x4   :  { %s2865_s18 = smov 20   ;;  %s2870_s24 = sld [smem:[#allocation6_spill]]  ;;  %v296_v21 = vld [vmem:[%s2847_s2 + $0x8] sm:$0xff]  ;;  %v297_v26 = vld [vmem:[%s2847_s2 + $0x10] sm:$0xff]  ;;  %v298_v27 = vld [vmem:[%s2847_s2 + $0x18] sm:$0xff]  ;;  %vm138_vm3 = vcmask 1043456  }
   0x5   :  { %s2871_s22 = smov 20   ;;  %v1870_v34 = vpack.c.bf16 %v296_v21, %v295_v20  ;;  %v1874_v36 = vpack.c.bf16 %v298_v27, %v297_v26  ;;  %s2053_s21 = smov 60   ;;  %v299_v39 = vld [vmem:[%s2847_s2 + $0x20] sm:$0xff]  ;;  %v300_v40 = vld [vmem:[%s2847_s2 + $0x28] sm:$0xff] }
   0x7   :  { %1871 = vmatprep.subr.bf16.mxu1 %v1870_v34 }
   0x8   :  { %1873 = vmatpush3.bf16.msra.mxu1 %v1870_v34 }
   0x9   :  { %v2159_v0 = vld [vmem:[%s2869_s26] sm:$0xff]  ;;  %v2164_v1 = vld [vmem:[%s2869_s26 + $0x8] sm:$0xff]  ;;  %v2173_v6 = vld [vmem:[%s2869_s26 + $0x10] sm:$0xf] }
   0xa   :  { %v93_v2 = vrot.slane %v2159_v0, 2  ;;  %v94_v3 = vrot.slane %v2164_v1, 2  ;;  %v70_v4 = vrot.slane %v2159_v0, 1  ;;  %v71_v5 = vrot.slane %v2164_v1, 1  ;;  %v2189_v16 = vld [vmem:[%s2869_s26 + $0x18] sm:$0xff]  ;;  %v2194_v17 = vld [vmem:[%s2869_s26 + $0x20] sm:$0xff] }
   0xb   :  { %v96_v7 = vrot.slane %v2173_v6, 2  ;;  %v73_v8 = vrot.slane %v2173_v6, 1  ;;  %v117_v11 = vrot.slane %v2164_v1, 3  ;;  %v119_v14 = vrot.slane %v2173_v6, 3  ;;  %v181_v18 = vld [vmem:[%s2870_s24] sm:$0xff]  ;;  %v182_v19 = vld [vmem:[%s2870_s24 + $0x8] sm:$0xff] }
   0xc   :  { %v95_v9 = vsel %vm92_vm0, %v93_v2, %v94_v3  ;;  %v72_v10 = vsel %vm69_vm1, %v70_v4, %v71_v5  ;;  %v116_v15 = vrot.slane %v2159_v0, 3  ;;  %v183_v22 = vld [vmem:[%s2870_s24 + $0x10] sm:$0xff]  ;;  %v184_v23 = vld [vmem:[%s2870_s24 + $0x18] sm:$0xff]  ;;  %v75_v24 = vrot.slane %v2189_v16, 1  ;;  %v2231_v32 = vld [vmem:[%s2869_s26 + $0x28] sm:$0xf] }
   0xd   :  { %103 = vrot.lane.b32.xlu1 %v95_v9, %s2051_s30  ;;  %80 = vrot.lane.b32.xlu0 %v72_v10, %s2865_s18  ;;  %v97_v12 = vsel %vm92_vm0, %v94_v3, %v96_v7  ;;  %v74_v13 = vsel %vm69_vm1, %v71_v5, %v73_v8  ;;  %v76_v25 = vrot.slane %v2194_v17, 1  ;;  %v120_v28 = vsel %vm115_vm2, %v117_v11, %v119_v14  ;;  %v185_v37 = vld [vmem:[%s2870_s24 + $0x20] sm:$0xff]  ;;  %v186_v38 = vld [vmem:[%s2870_s24 + $0x28] sm:$0xff] }
   0xe   :  { %v118_v29 = vsel %vm115_vm2, %v116_v15, %v117_v11  ;;  %v139_v30 = vrot.slane %v2159_v0, 4  ;;  %v140_v31 = vrot.slane %v2164_v1, 4  ;;  %v1846_v33 = vpack.c.bf16 %v182_v19, %v181_v18 }
   0xf   :  { %v1850_v35 = vpack.c.bf16 %v184_v23, %v183_v22  ;;  %v77_v41 = vsel %vm69_vm1, %v75_v24, %v76_v25  ;;  %v78_v43 = vrot.slane %v2231_v32, 1  ;;  %v142_v44 = vrot.slane %v2173_v6, 4 }
  0x10   :  { %v141_v42 = vsel %vm138_vm3, %v139_v30, %v140_v31  ;;  %1847 = vmatprep.subr.bf16.mxu0 %v1846_v33 }
  0x11   :  { %105 = vrot.lane.b32.xlu1 %v97_v12, %s2051_s30  ;;  %82 = vrot.lane.b32.xlu0 %v74_v13, %s2871_s22 }
  0x12   :  { %1849 = vmatpush3.bf16.msra.mxu0 %v1846_v33 }
  0x15   :  { %128 = vrot.lane.b32.xlu1 %v120_v28, %s2053_s21  ;;  %126 = vrot.lane.b32.xlu0 %v118_v29, %s2053_s21 }
  0x16   :  { %22 = vsyncpa [#allocation3], 0  ;;  %1851 = vmatprep.subr.bf16.mxu0 %v1850_v35  ;;  %1875 = vmatprep.subr.bf16.mxu1 %v1874_v36  ;;  %v1854_v45 = vpack.c.bf16 %v186_v38, %v185_v37  ;;  %v1878_v46 = vpack.c.bf16 %v300_v40, %v299_v39  ;;  %v187_v47 = vld [vmem:[%s2870_s24 + $0x30] sm:$0xff]  ;;  %v188_v48 = vld [vmem:[%s2870_s24 + $0x38] sm:$0xff]  ;;  %s2054_s19 = smov 80   ;;  %v99_v49 = vrot.slane %v2194_v17, 2  ;;  %v79_v52 = vsel %vm69_vm1, %v76_v25, %v78_v43 }
  0x17   :  { %v301_v50 = vld [vmem:[%s2847_s2 + $0x30] sm:$0xff]  ;;  %v302_v51 = vld [vmem:[%s2847_s2 + $0x38] sm:$0xff]  ;;  %v143_v53 = vsel %vm138_vm3, %v140_v31, %v142_v44  ;;  %v101_v54 = vrot.slane %v2231_v32, 2  ;;  %v98_v55 = vrot.slane %v2189_v16, 2  ;;  %1853 = vmatpush3.bf16.msra.mxu0 %v1850_v35  ;;  %1877 = vmatpush3.bf16.msra.mxu1 %v1874_v36  ;;  %v1858_v56 = vpack.c.bf16 %v188_v48, %v187_v47  ;;  %v189_v58 = vld [vmem:[%s2870_s24 + $0x40] sm:$0xff]  ;;  %s2064_s26 = smov 96  }
  0x18   :  { %1855 = vmatprep.subr.bf16.mxu0 %v1854_v45  ;;  %1879 = vmatprep.subr.bf16.mxu1 %v1878_v46  ;;  %v1882_v57 = vpack.c.bf16 %v302_v51, %v301_v50  ;;  %v190_v59 = vld [vmem:[%s2870_s24 + $0x48] sm:$0xff]  ;;  %v122_v60 = vrot.slane %v2194_v17, 3  ;;  %v303_v61 = vld [vmem:[%s2847_s2 + $0x40] sm:$0xff]  ;;  %v124_v3 = vrot.slane %v2231_v32, 3  ;;  %v121_v4 = vrot.slane %v2189_v16, 3  ;;  %v191_v7 = vld [vmem:[%s2870_s24 + $0x50] sm:$0xff] }
  0x19   :  { %84 = vrot.lane.b32.xlu1 %v77_v41, %s2871_s22  ;;  %149 = vrot.lane.b32.xlu0 %v141_v42, %s2054_s19  ;;  %v304_v62 = vld [vmem:[%s2847_s2 + $0x48] sm:$0xff]  ;;  %v102_v63 = vsel %vm92_vm0, %v99_v49, %v101_v54  ;;  %v100_v2 = vsel %vm92_vm0, %v98_v55, %v99_v49  ;;  %v1862_v5 = vpack.c.bf16 %v190_v59, %v189_v58  ;;  %v192_v8 = vld [vmem:[%s2870_s24 + $0x58] sm:$0xff]  ;;  %v145_v9 = vrot.slane %v2194_v17, 4 }
  0x1a   :  { %v1886_v6 = vpack.c.bf16 %v304_v62, %v303_v61  ;;  %v305_v10 = vld [vmem:[%s2847_s2 + $0x50] sm:$0xff]  ;;  %v306_v11 = vld [vmem:[%s2847_s2 + $0x58] sm:$0xff]  ;;  %v125_v12 = vsel %vm115_vm2, %v122_v60, %v124_v3  ;;  %v123_v13 = vsel %vm115_vm2, %v121_v4, %v122_v60  ;;  %v147_v14 = vrot.slane %v2231_v32, 4  ;;  %v193_v22 = vld [vmem:[%s2870_s24 + $0x60] sm:$0xf] }
  0x1b   :  { %1857 = vmatpush3.bf16.msra.mxu0 %v1854_v45  ;;  %1881 = vmatpush3.bf16.msra.mxu1 %v1878_v46  ;;  %v144_v15 = vrot.slane %v2189_v16, 4  ;;  %v1866_v18 = vpack.c.bf16 %v192_v8, %v191_v7  ;;  %v1890_v19 = vpack.c.bf16 %v306_v11, %v305_v10  ;;  %v307_v23 = vld [vmem:[%s2847_s2 + $0x60] sm:$0xf]  ;;  %vm161_vm4 = vcmask 162816   ;;  %v780_v58 = vld [vmem:[%s2849_s4 + $0x10] sm:$0xff]  ;;  %v781_v59 = vld [vmem:[%s2849_s4 + $0x18] sm:$0xff] }
  0x1c   :  { %1859 = vmatprep.subr.bf16.mxu0 %v1858_v56  ;;  %1883 = vmatprep.subr.bf16.mxu1 %v1882_v57  ;;  %v148_v20 = vsel %vm138_vm3, %v145_v9, %v147_v14  ;;  %vm166_vm5 = vcmask 326656   ;;  %vm171_vm6 = vcmask 490496   ;;  %vm176_vm7 = vcmask 654336   ;;  %v917_v54 = vld [vmem:[%s2850_s5] sm:$0xff]  ;;  %v919_v61 = vld [vmem:[%s2850_s5 + $0x10] sm:$0xff]  ;;  %v920_v62 = vld [vmem:[%s2850_s5 + $0x18] sm:$0xff] }
  0x1d   :  { %86 = vrot.lane.b32.xlu1 %v79_v52, %s2871_s22  ;;  %151 = vrot.lane.b32.xlu0 %v143_v53, %s2054_s19  ;;  %v146_v21 = vsel %vm138_vm3, %v144_v15, %v145_v9  ;;  %vm194_vm8 = vcmask 818176   ;;  %v2055_v55 = vmov 0.0|0.0   ;;  %v782_v3 = vld [vmem:[%s2849_s4 + $0x20] sm:$0xff]  ;;  %v783_v4 = vld [vmem:[%s2849_s4 + $0x28] sm:$0xff]  ;;  %vm488_vm9 = vcmask 648192  }
  0x1e   :  { %v1901_v7 = vpack.c.bf16 %v783_v4, %v782_v3  ;;  %v784_v9 = vld [vmem:[%s2849_s4 + $0x30] sm:$0xff]  ;;  %v785_v10 = vld [vmem:[%s2849_s4 + $0x38] sm:$0xff]  ;;  %v786_v15 = vld [vmem:[%s2849_s4 + $0x40] sm:$0xff]  ;;  %vm653_vm10 = vcmask 1041409   ;;  %vm656_vm11 = vcmask 1042434   ;;  %vm659_vm12 = vcmask 1043459  }
  0x1f   :  { %1861 = vmatpush3.bf16.msra.mxu0 %v1858_v56  ;;  %1885 = vmatpush3.bf16.msra.mxu1 %v1882_v57  ;;  %v918_v57 = vld [vmem:[%s2850_s5 + $0x8] sm:$0xff]  ;;  %v923_v11 = vld [vmem:[%s2850_s5 + $0x30] sm:$0xff]  ;;  %vm662_vm13 = vcmask 1044484   ;;  %vm665_vm14 = vcmask 1045509   ;;  %vm737_vm15 = vcmask 261120   ;;  %vm837_vm0 = vcmask 916480  }
  0x20   :  { %1863 = vmatprep.subr.bf16.mxu0 %v1862_v5  ;;  %1887 = vmatprep.subr.bf16.mxu1 %v1886_v6  ;;  %v1940_v60 = vpack.c.bf16 %v918_v57, %v917_v54  ;;  %vm1057_vm1 = vcmask 140288   ;;  %vm2059_vm2 = vmmov 0  }
  0x21   :  { %109 = vrot.lane.b32.xlu1 %v102_v63, %s2051_s30  ;;  %107 = vrot.lane.b32.xlu0 %v100_v2, %s2051_s30  ;;  %v1898_v63 = vpack.c.bf16 %v781_v59, %v780_v58  ;;  %v1943_v2 = vpack.c.bf16 %v920_v62, %v919_v61 }
  0x23   :  { %1865 = vmatpush3.bf16.msra.mxu0 %v1862_v5  ;;  %1889 = vmatpush3.bf16.msra.mxu1 %v1886_v6  ;;  %v921_v5 = vld [vmem:[%s2850_s5 + $0x20] sm:$0xff]  ;;  %v922_v6 = vld [vmem:[%s2850_s5 + $0x28] sm:$0xff] }
  0x24   :  { %1867 = vmatprep.subr.bf16.mxu0 %v1866_v18  ;;  %1891 = vmatprep.subr.bf16.mxu1 %v1890_v19  ;;  %v1946_v8 = vpack.c.bf16 %v922_v6, %v921_v5 }
  0x25   :  { %132 = vrot.lane.b32.xlu1 %v125_v12, %s2053_s21  ;;  %130 = vrot.lane.b32.xlu0 %v123_v13, %s2053_s21  ;;  %v924_v12 = vld [vmem:[%s2850_s5 + $0x38] sm:$0xff]  ;;  %v1904_v13 = vpack.c.bf16 %v785_v10, %v784_v9 }
  0x26   :  { %v1949_v14 = vpack.c.bf16 %v924_v12, %v923_v11 }
  0x27   :  { %1869 = vmatpush3.bf16.msra.mxu0 %v1866_v18  ;;  %1893 = vmatpush3.bf16.msra.mxu1 %v1890_v19  ;;  %v787_v18 = vld [vmem:[%s2849_s4 + $0x48] sm:$0xff]  ;;  %v925_v19 = vld [vmem:[%s2850_s5 + $0x40] sm:$0xff] }
  0x28   :  { %1765 = vmatprep.subr.msk.mxu0 %vm138_vm3, %v193_v22  ;;  %1797 = vmatprep.subr.msk.mxu1 %vm138_vm3, %v307_v23 }
  0x29   :  { %155 = vrot.lane.b32.xlu1 %v148_v20, %s2054_s19  ;;  %153 = vrot.lane.b32.xlu0 %v146_v21, %s2054_s19  ;;  %v926_v20 = vld [vmem:[%s2850_s5 + $0x48] sm:$0xff]  ;;  %v1907_v21 = vpack.c.bf16 %v787_v18, %v786_v15 }
  0x2b   :  { %1766 = vmatpush3.msk.msra.mxu0 %vm138_vm3, %v193_v22  ;;  %1798 = vmatpush3.msk.msra.mxu1 %vm138_vm3, %v307_v23  ;;  %v1952_v22 = vpack.c.bf16 %v926_v20, %v925_v19  ;;  %v788_v23 = vld [vmem:[%s2849_s4 + $0x50] sm:$0xff] }
  0x2c   :  { %1894 = vmatprep.subr.bf16.mxu0 %v2055_v55  ;;  %1939 = vmatprep.subr.bf16.mxu1 %v2055_v55 }
  0x7f   :  { %v104_v24 = vpop.permute.xlu1 %103  ;;  %v81_v25 = vpop.permute.xlu0 %80 }
  0x80   :  { %v162_v28 = vsel %vm161_vm4, %v2159_v0, %v81_v25  ;;  %v927_v25 = vld [vmem:[%s2850_s5 + $0x50] sm:$0xff] }
  0x81   :  { %v167_v31 = vsel %vm166_vm5, %v162_v28, %v104_v24  ;;  %v789_v24 = vld [vmem:[%s2849_s4 + $0x58] sm:$0xff] }
  0x83   :  { %v106_v26 = vpop.permute.xlu1 %105  ;;  %v83_v27 = vpop.permute.xlu0 %82 }
  0x84   :  { %v163_v32 = vsel %vm161_vm4, %v2164_v1, %v83_v27  ;;  %v1910_v27 = vpack.c.bf16 %v789_v24, %v788_v23 }
  0x85   :  { %v168_v0 = vsel %vm166_vm5, %v163_v32, %v106_v26  ;;  %v928_v26 = vld [vmem:[%s2850_s5 + $0x58] sm:$0xff]  ;;  %v930_v32 = vld [vmem:[%s2850_s5 + $0x68] sm:$0xff] }
  0x86   :  { %v1955_v28 = vpack.c.bf16 %v928_v26, %v927_v25 }
  0x87   :  { %v129_v29 = vpop.permute.xlu1 %128  ;;  %v127_v30 = vpop.permute.xlu0 %126 }
  0x88   :  { %v172_v33 = vsel %vm171_vm6, %v167_v31, %v127_v30  ;;  %v173_v37 = vsel %vm171_vm6, %v168_v0, %v129_v29  ;;  %v790_v29 = vld [vmem:[%s2849_s4 + $0x60] sm:$0xff]  ;;  %v791_v30 = vld [vmem:[%s2849_s4 + $0x68] sm:$0xff]  ;;  %v931_v0 = vld [vmem:[%s2850_s5 + $0x70] sm:$0xff] }
  0x89   :  { %v929_v31 = vld [vmem:[%s2850_s5 + $0x60] sm:$0xff] }
  0x8b   :  { %v85_v34 = vpop.permute.xlu1 %84  ;;  %v150_v35 = vpop.permute.xlu0 %149 }
  0x8c   :  { %v177_v36 = vsel %vm176_vm7, %v172_v33, %v150_v35  ;;  %v164_v44 = vsel %vm161_vm4, %v2189_v16, %v85_v34  ;;  %v778_v16 = vld [vmem:[%s2849_s4] sm:$0xff]  ;;  %v1913_v33 = vpack.c.bf16 %v791_v30, %v790_v29  ;;  %v1958_v34 = vpack.c.bf16 %v930_v32, %v929_v31  ;;  %v792_v35 = vld [vmem:[%s2849_s4 + $0x70] sm:$0xff] }
  0x8d   :  { %1767 = vmatprep.mubr.msk.f32.mxu0 %vm194_vm8, %v177_v36  ;;  %1799 = vmatprep.mubr.msk.f32.mxu1 %vm194_vm8, %v177_v36  ;;  %v793_v36 = vld [vmem:[%s2849_s4 + $0x78] sm:$0xff] }
  0x8f   :  { %v87_v38 = vpop.permute.xlu1 %86  ;;  %v152_v39 = vpop.permute.xlu0 %151 }
  0x90   :  { %v178_v40 = vsel %vm176_vm7, %v173_v37, %v152_v39  ;;  %v165_v45 = vsel %vm161_vm4, %v2194_v17, %v87_v38  ;;  %v779_v17 = vld [vmem:[%s2849_s4 + $0x8] sm:$0xff]  ;;  %v932_v37 = vld [vmem:[%s2850_s5 + $0x78] sm:$0xff]  ;;  %v1916_v38 = vpack.c.bf16 %v793_v36, %v792_v35  ;;  %vm1141_vm4 = vcmask 146432  }
  0x91   :  { %1768 = vmatmul.mubr.msk.f32.vlgmr.msra.gmra.mrb[0].mxu0 %vm194_vm8, %v178_v40  ;;  %1800 = vmatmul.mubr.msk.f32.vlgmr.msra.gmra.mrb[0].mxu1 %vm194_vm8, %v178_v40  ;;  %v1895_v56 = vpack.c.bf16 %v779_v17, %v778_v16  ;;  %v1961_v39 = vpack.c.bf16 %v932_v37, %v931_v0  ;;  %v794_v40 = vld [vmem:[%s2849_s4 + $0x80] sm:$0xff] }
  0x92   :  { %1941 = vmatpush1.bf16.msra.mxu1 %v1940_v60 }
  0x93   :  { %v110_v1 = vpop.permute.xlu1 %109  ;;  %v108_v41 = vpop.permute.xlu0 %107  ;;  %1896 = vmatpush1.bf16.msra.mxu0 %v1895_v56  ;;  %1942 = vmatprep.subr.bf16.mxu1 %v2055_v55 }
  0x94   :  { %v170_v46 = vsel %vm166_vm5, %v165_v45, %v110_v1  ;;  %v169_v47 = vsel %vm166_vm5, %v164_v44, %v108_v41  ;;  %1897 = vmatprep.subr.bf16.mxu0 %v2055_v55  ;;  %v795_v1 = vld [vmem:[%s2849_s4 + $0x88] sm:$0xff]  ;;  %v933_v41 = vld [vmem:[%s2850_s5 + $0x80] sm:$0xff]  ;;  %v2056_v45 = vmov 1983009808   ;;  %vm1159_vm5 = vcmask 293888  }
  0x96   :  { %1944 = vmatpush1.bf16.msra.mxu1 %v1943_v2 }
  0x97   :  { %v133_v42 = vpop.permute.xlu1 %132  ;;  %v131_v43 = vpop.permute.xlu0 %130  ;;  %1899 = vmatpush1.bf16.msra.mxu0 %v1898_v63  ;;  %1945 = vmatprep.subr.bf16.mxu1 %v2055_v55 }
  0x98   :  { %v175_v48 = vsel %vm171_vm6, %v170_v46, %v133_v42  ;;  %v174_v49 = vsel %vm171_vm6, %v169_v47, %v131_v43  ;;  %1900 = vmatprep.subr.bf16.mxu0 %v2055_v55  ;;  %v934_v42 = vld [vmem:[%s2850_s5 + $0x88] sm:$0xff]  ;;  %v1919_v43 = vpack.c.bf16 %v795_v1, %v794_v40  ;;  %v406_v46 = vunpack.c.l.s4 %v2056_v45 }
  0x99   :  { %v1964_v44 = vpack.c.bf16 %v934_v42, %v933_v41  ;;  %v408_v47 = vlaneseq  ;;  %vm2061_vm6 = vmmov 1  }
  0x9a   :  { %1947 = vmatpush1.bf16.msra.mxu1 %v1946_v8 }
  0x9b   :  { %v156_v50 = vpop.permute.xlu1 %155  ;;  %v154_v51 = vpop.permute.xlu0 %153  ;;  %1902 = vmatpush1.bf16.msra.mxu0 %v1901_v7  ;;  %1948 = vmatprep.subr.bf16.mxu1 %v2055_v55 }
  0x9c   :  { %v180_v52 = vsel %vm176_vm7, %v175_v48, %v156_v50  ;;  %v179_v53 = vsel %vm176_vm7, %v174_v49, %v154_v51  ;;  %1903 = vmatprep.subr.bf16.mxu0 %v2055_v55  ;;  %v407_v48 = vunpack.c.0.s8 %v406_v46  ;;  %v2480_v49 = vshrl.u32 %v408_v47, 7  ;;  %v2504_v46 = vld [vmem:[%s2848_s3] ss:$0 sm:$0xff]  ;;  %s2057_s3 = smov 32  }
  0x9d   :  { %1770 = vmatprep.mubr.msk.f32.mxu0 %vm194_vm8, %v179_v53  ;;  %1802 = vmatprep.mubr.msk.f32.mxu1 %vm194_vm8, %v179_v53 }
  0x9e   :  { %1771 = vmatmul.mubr.msk.f32.gmra.mrb[2].mxu0 %vm194_vm8, %v180_v52  ;;  %1803 = vmatmul.mubr.msk.f32.gmra.mrb[2].mxu1 %vm194_vm8, %v180_v52  ;;  %v2483_v50 = vsub.s32 %v407_v48, %v2480_v49  ;;  %vm1292_vm8 = vcmask 97280  }
  0x9f   :  { %1905 = vmatpush1.bf16.msra.mxu0 %v1904_v13  ;;  %1950 = vmatpush1.bf16.msra.mxu1 %v1949_v14 }
  0xa0   :  { %1906 = vmatprep.subr.bf16.mxu0 %v2055_v55  ;;  %1951 = vmatprep.subr.bf16.mxu1 %v2055_v55 }
  0xa3   :  { %1908 = vmatpush1.bf16.msra.mxu0 %v1907_v21  ;;  %1953 = vmatpush1.bf16.msra.mxu1 %v1952_v22 }
  0xa4   :  { %1909 = vmatprep.subr.bf16.mxu0 %v2055_v55  ;;  %1954 = vmatprep.subr.bf16.mxu1 %v2055_v55 }
  0xa7   :  { %1911 = vmatpush1.bf16.msra.mxu0 %v1910_v27  ;;  %1956 = vmatpush1.bf16.msra.mxu1 %v1955_v28 }
  0xa8   :  { %1912 = vmatprep.subr.bf16.mxu0 %v2055_v55  ;;  %1957 = vmatprep.subr.bf16.mxu1 %v2055_v55 }
  0xab   :  { %1914 = vmatpush1.bf16.msra.mxu0 %v1913_v33  ;;  %1959 = vmatpush1.bf16.msra.mxu1 %v1958_v34 }
  0xac   :  { %1915 = vmatprep.subr.bf16.mxu0 %v2055_v55  ;;  %1960 = vmatprep.subr.bf16.mxu1 %v2055_v55 }
  0xaf   :  { %1917 = vmatpush1.bf16.msra.mxu0 %v1916_v38  ;;  %1962 = vmatpush1.bf16.msra.mxu1 %v1961_v39 }
  0xb0   :  { %1918 = vmatprep.subr.bf16.mxu0 %v2055_v55  ;;  %1963 = vmatprep.subr.bf16.mxu1 %v2055_v55 }
  0xb3   :  { %1920 = vmatpush1.bf16.msra.mxu0 %v1919_v43  ;;  %1965 = vmatpush1.bf16.msra.mxu1 %v1964_v44 }
  0xb4   :  { %1921 = vmatprep.subr.bf16.mxu0 %v2055_v55  ;;  %1966 = vmatprep.subr.bf16.mxu1 %v2055_v55 }
 0x164   :  { %v1769_v51 = vpop.f32.mrb[0].mxu0  ;;  %v1801_v52 = vpop.f32.mrb[0].mxu1 }
 0x165   :  { %v397_v53 = vmax.f32 %v1769_v51, %v1801_v52  ;;  %v276_v16 = vpop.f32.mrb[1].mxu0  ;;  %v377_v17 = vpop.f32.mrb[1].mxu1 }
 0x166   :  { %v396_v54 = vmax.f32 %v276_v16, %v377_v17 }
 0x167   :  { %v421_v56 = vcombine.high %v397_v53, %v397_v53  ;;  %v428_v57 = vrot.slane %v397_v53, %v2483_v50 }
 0x168   :  { %v404_v58 = vcombine.high %v396_v54, %v396_v54  ;;  %v411_v59 = vrot.slane %v396_v54, %v2483_v50 }
 0x169   :  { %v435_v60 = vrot.slane %v421_v56, %v2483_v50  ;;  %v436_v61 = vcombine.high %v428_v57, %v428_v57  ;;  %v517_v62 = vsel %vm488_vm9, %v428_v57, -inf }
 0x16a   :  { %v518_v63 = vrot.slane %v517_v62, 4  ;;  %v418_v2 = vrot.slane %v404_v58, %v2483_v50  ;;  %v419_v3 = vcombine.high %v411_v59, %v411_v59  ;;  %v489_v4 = vsel %vm488_vm9, %v411_v59, -inf }
 0x16b   :  { %v437_v5 = vcombine.high %v435_v60, %v435_v60  ;;  %v524_v6 = vsel %vm488_vm9, %v436_v61, -inf  ;;  %v531_v7 = vsel %vm488_vm9, %v435_v60, -inf  ;;  %v490_v8 = vrot.slane %v489_v4, 4 }
 0x16c   :  { %v519_v9 = vmax.f32 %v517_v62, %v518_v63  ;;  %v525_v10 = vrot.slane %v524_v6, 4  ;;  %v532_v11 = vrot.slane %v531_v7, 4  ;;  %v420_v12 = vcombine.high %v418_v2, %v418_v2 }
 0x16d   :  { %v538_v13 = vsel %vm488_vm9, %v437_v5, -inf  ;;  %v491_v14 = vmax.f32 %v489_v4, %v490_v8  ;;  %v496_v15 = vsel %vm488_vm9, %v419_v3, -inf  ;;  %v503_v18 = vsel %vm488_vm9, %v418_v2, -inf }
 0x16e   :  { %v520_v19 = vrot.slane %v519_v9, 2  ;;  %v526_v20 = vmax.f32 %v524_v6, %v525_v10  ;;  %v533_v21 = vmax.f32 %v531_v7, %v532_v11  ;;  %v539_v22 = vrot.slane %v538_v13, 4 }
 0x16f   :  { %v492_v23 = vrot.slane %v491_v14, 2  ;;  %v497_v24 = vrot.slane %v496_v15, 4  ;;  %v504_v25 = vrot.slane %v503_v18, 4  ;;  %v510_v26 = vsel %vm488_vm9, %v420_v12, -inf }
 0x170   :  { %v521_v27 = vmax.f32 %v519_v9, %v520_v19  ;;  %v527_v28 = vrot.slane %v526_v20, 2  ;;  %v534_v29 = vrot.slane %v533_v21, 2  ;;  %v511_v33 = vrot.slane %v510_v26, 4 }
 0x171   :  { %v493_v30 = vmax.f32 %v491_v14, %v492_v23  ;;  %v498_v31 = vmax.f32 %v496_v15, %v497_v24  ;;  %v505_v32 = vmax.f32 %v503_v18, %v504_v25  ;;  %v1772_v34 = vpop.f32.mrb[2].mxu0  ;;  %v1804_v35 = vpop.f32.mrb[2].mxu1  ;;  %v2499_v38 = vmax.f32 %v538_v13, %v539_v22 }
 0x172   :  { %v522_v36 = vrot.slane %v521_v27, 1  ;;  %v528_v0 = vmax.f32 %v526_v20, %v527_v28  ;;  %v2497_v37 = vmax.f32 %v533_v21, %v534_v29  ;;  %v286_v39 = vpop.f32.mrb[3].mxu0  ;;  %v387_v40 = vpop.f32.mrb[3].mxu1  ;;  %v512_v43 = vmax.f32 %v510_v26, %v511_v33 }
 0x173   :  { %v494_v1 = vrot.slane %v493_v30, 1  ;;  %v499_v41 = vrot.slane %v498_v31, 2  ;;  %v506_v42 = vrot.slane %v505_v32, 2  ;;  %v399_v47 = vmax.f32 %v1772_v34, %v1804_v35 }
 0x174   :  { %v523_v44 = vmax.f32 %v521_v27, %v522_v36  ;;  %v529_v45 = vrot.slane %v528_v0, 1  ;;  %v513_v53 = vrot.slane %v512_v43, 2  ;;  %v536_v16 = vrot.slane %v2497_v37, 1 }
 0x175   :  { %v495_v48 = vmax.f32 %v493_v30, %v494_v1  ;;  %v500_v51 = vmax.f32 %v498_v31, %v499_v41  ;;  %v507_v52 = vmax.f32 %v505_v32, %v506_v42  ;;  %v541_v17 = vrot.slane %v2499_v38, 2 }
 0x176   :  { %v455_v54 = vcombine.high %v399_v47, %v399_v47  ;;  %v462_v56 = vrot.slane %v399_v47, %v2483_v50  ;;  %v514_v59 = vmax.f32 %v512_v43, %v513_v53  ;;  %v530_v61 = vmax.f32 %v528_v0, %v529_v45 }
 0x177   :  { %v501_v57 = vrot.slane %v500_v51, 1  ;;  %v508_v58 = vrot.slane %v507_v52, 1  ;;  %v2510_v60 = vadd.f32 %v2504_v46, %v495_v48  ;;  %v612_v3 = vadd.f32 %v2504_v46, %v523_v44 }
 0x178   :  { %v469_v62 = vrot.slane %v455_v54, %v2483_v50  ;;  %v470_v63 = vcombine.high %v462_v56, %v462_v56  ;;  %v573_v2 = vsel %vm488_vm9, %v462_v56, -inf  ;;  %v515_v6 = vrot.slane %v514_v59, 1 }
 0x179   :  { %v502_v4 = vmax.f32 %v500_v51, %v501_v57  ;;  %v509_v5 = vmax.f32 %v507_v52, %v508_v58  ;;  %v574_v8 = vrot.slane %v573_v2, 4  ;;  %v398_v20 = vmax.f32 %v286_v39, %v387_v40 }
 0x17a   :  { %v471_v7 = vcombine.high %v469_v62, %v469_v62  ;;  %v580_v9 = vsel %vm488_vm9, %v470_v63, -inf  ;;  %v587_v10 = vsel %vm488_vm9, %v469_v62, -inf  ;;  %v516_v11 = vmax.f32 %v514_v59, %v515_v6 }
 0x17b   :  { %v2518_v12 = vadd.f32 %v2504_v46, %v502_v4  ;;  %v610_v13 = vadd.f32 %v2504_v46, %v509_v5  ;;  %v581_v14 = vrot.slane %v580_v9, 4  ;;  %v575_v15 = vmax.f32 %v573_v2, %v574_v8 }
 0x17c   :  { %v588_v18 = vrot.slane %v587_v10, 4  ;;  %v594_v19 = vsel %vm488_vm9, %v471_v7, -inf  ;;  %v2522_v21 = vmax.f32 %v612_v3, 0.0  ;;  %v611_v22 = vadd.f32 %v2504_v46, %v516_v11 }
 0x17d   :  { %v624_v23 = vmax.f32 %v2510_v60, 0.0  ;;  %v582_v24 = vmax.f32 %v580_v9, %v581_v14  ;;  %v576_v25 = vrot.slane %v575_v15, 2  ;;  %v595_v27 = vrot.slane %v594_v19, 4  ;;  %v796_v60 = vld [vmem:[%s2849_s4 + $0x90] sm:$0xff] }
 0x17e   :  { %v589_v26 = vmax.f32 %v587_v10, %v588_v18  ;;  %v438_v28 = vcombine.high %v398_v20, %v398_v20  ;;  %v625_v29 = vmax.f32 %v2518_v12, 0.0  ;;  %v2527_v30 = vmax.f32 %v610_v13, 0.0 }
 0x17f   :  { %v583_v31 = vrot.slane %v582_v24, 2  ;;  %v445_v32 = vrot.slane %v398_v20, %v2483_v50  ;;  %v2530_v33 = vmax.f32 %v611_v22, 0.0  ;;  %v577_v34 = vmax.f32 %v575_v15, %v576_v25 }
 0x180   :  { %v590_v35 = vrot.slane %v589_v26, 2  ;;  %v452_v36 = vrot.slane %v438_v28, %v2483_v50  ;;  %v2533_v39 = vmax.f32 %v594_v19, %v595_v27  ;;  %v537_v44 = vmax.f32 %v2497_v37, %v536_v16 }
 0x181   :  { %v584_v0 = vmax.f32 %v582_v24, %v583_v31  ;;  %v453_v40 = vcombine.high %v445_v32, %v445_v32  ;;  %v545_v1 = vsel %vm488_vm9, %v445_v32, -inf  ;;  %v578_v41 = vrot.slane %v577_v34, 1 }
 0x182   :  { %v2536_v42 = vmax.f32 %v589_v26, %v590_v35  ;;  %v454_v43 = vcombine.high %v452_v36, %v452_v36  ;;  %v546_v47 = vrot.slane %v545_v1, 4  ;;  %v559_v51 = vsel %vm488_vm9, %v452_v36, -inf }
 0x183   :  { %v585_v45 = vrot.slane %v584_v0, 1  ;;  %v552_v48 = vsel %vm488_vm9, %v453_v40, -inf  ;;  %v579_v52 = vmax.f32 %v577_v34, %v578_v41  ;;  %v560_v56 = vrot.slane %v559_v51, 4 }
 0x184   :  { %v592_v53 = vrot.slane %v2536_v42, 1  ;;  %v553_v54 = vrot.slane %v552_v48, 4  ;;  %v547_v58 = vmax.f32 %v545_v1, %v546_v47  ;;  %v566_v59 = vsel %vm488_vm9, %v454_v43, -inf }
 0x185   :  { %v586_v57 = vmax.f32 %v584_v0, %v585_v45  ;;  %v613_v62 = vadd.f32 %v2504_v46, %v530_v61  ;;  %v620_v37 = vadd.f32 %v2504_v46, %v579_v52  ;;  %v561_v63 = vmax.f32 %v559_v51, %v560_v56 }
 0x186   :  { %v554_v16 = vmax.f32 %v552_v48, %v553_v54  ;;  %v567_v2 = vrot.slane %v566_v59, 4  ;;  %v548_v3 = vrot.slane %v547_v58, 2  ;;  %v614_v4 = vadd.f32 %v2504_v46, %v537_v44 }
 0x187   :  { %v2546_v5 = vmax.f32 %v613_v62, 0.0  ;;  %v681_v6 = vrot.slane %v2527_v30, 7  ;;  %v2549_v7 = vmax.f32 %v620_v37, 0.0  ;;  %v562_v9 = vrot.slane %v561_v63, 2 }
 0x188   :  { %v555_v8 = vrot.slane %v554_v16, 2  ;;  %v568_v10 = vmax.f32 %v566_v59, %v567_v2  ;;  %v549_v11 = vmax.f32 %v547_v58, %v548_v3  ;;  %v630_v13 = vmax.f32 %v614_v4, 0.0 }
 0x189   :  { %v682_v61 = vsel %vm653_vm10, %v681_v6, %v625_v29  ;;  %v683_v14 = vrot.slane %v2530_v33, 6  ;;  %v563_v18 = vmax.f32 %v561_v63, %v562_v9  ;;  %v685_v20 = vrot.slane %v2522_v21, 5 }
 0x18a   :  { %v556_v15 = vmax.f32 %v554_v16, %v555_v8  ;;  %v569_v19 = vrot.slane %v568_v10, 2  ;;  %v550_v22 = vrot.slane %v549_v11, 1  ;;  %v687_v25 = vrot.slane %v2546_v5, 4 }
 0x18b   :  { %v684_v24 = vsel %vm656_vm11, %v683_v14, %v682_v61  ;;  %v689_v26 = vrot.slane %v630_v13, 3  ;;  %v564_v28 = vrot.slane %v563_v18, 1  ;;  %v542_v36 = vmax.f32 %v2499_v38, %v541_v17 }
 0x18c   :  { %v557_v27 = vrot.slane %v556_v15, 1  ;;  %v570_v31 = vmax.f32 %v568_v10, %v569_v19  ;;  %v686_v32 = vsel %vm659_vm12, %v685_v20, %v684_v24  ;;  %v551_v34 = vmax.f32 %v549_v11, %v550_v22 }
 0x18d   :  { %v688_v35 = vsel %vm662_vm13, %v687_v25, %v686_v32  ;;  %v709_v0 = vrot.slane %v2530_v33, 7  ;;  %v565_v1 = vmax.f32 %v563_v18, %v564_v28  ;;  %v543_v45 = vrot.slane %v542_v36, 1 }
 0x18e   :  { %v558_v40 = vmax.f32 %v556_v15, %v557_v27  ;;  %v571_v41 = vrot.slane %v570_v31, 1  ;;  %v690_v43 = vsel %vm665_vm14, %v689_v26, %v688_v35  ;;  %v2566_v44 = vadd.f32 %v2504_v46, %v551_v34 }
 0x18f   :  { %701 = vrot.lane.b32.xlu0 %v690_v43, %s2054_s19  ;;  %v710_v47 = vsel %vm653_vm10, %v709_v0, %v2527_v30  ;;  %v711_v48 = vrot.slane %v2522_v21, 6  ;;  %v618_v17 = vadd.f32 %v2504_v46, %v565_v1  ;;  %v713_v52 = vrot.slane %v2546_v5, 5  ;;  %v936_v43 = vld [vmem:[%s2850_s5 + $0x98] sm:$0xff] }
 0x190   :  { %v572_v51 = vmax.f32 %v570_v31, %v571_v41  ;;  %v617_v38 = vadd.f32 %v2504_v46, %v558_v40  ;;  %v597_v54 = vrot.slane %v2533_v39, 2  ;;  %v544_v56 = vmax.f32 %v542_v36, %v543_v45 }
 0x191   :  { %v712_v58 = vsel %vm656_vm11, %v711_v48, %v710_v47  ;;  %v715_v59 = vrot.slane %v630_v13, 4  ;;  %v652_v62 = vrot.slane %v625_v29, 7  ;;  %v2580_v16 = vmax.f32 %v618_v17, 0.0 }
 0x192   :  { %v619_v37 = vadd.f32 %v2504_v46, %v572_v51  ;;  %v714_v63 = vsel %vm659_vm12, %v713_v52, %v712_v58  ;;  %v615_v2 = vadd.f32 %v2504_v46, %v544_v56  ;;  %v593_v4 = vmax.f32 %v2536_v42, %v592_v53  ;;  %v799_v51 = vld [vmem:[%s2849_s4 + $0xa8] sm:$0xff]  ;;  %v937_v56 = vld [vmem:[%s2850_s5 + $0xa0] sm:$0xff] }
 0x193   :  { %v716_v3 = vsel %vm662_vm13, %v715_v59, %v714_v63  ;;  %v621_v6 = vadd.f32 %v2504_v46, %v586_v57  ;;  %v633_v8 = vmax.f32 %v617_v38, 0.0  ;;  %v691_v12 = vrot.slane %v2580_v16, 7 }
 0x194   :  { %v2589_v9 = vmax.f32 %v619_v37, 0.0  ;;  %v695_v29 = vrot.slane %v2549_v7, 5  ;;  %v631_v10 = vmax.f32 %v615_v2, 0.0  ;;  %v622_v11 = vadd.f32 %v2504_v46, %v593_v4 }
 0x195   :  { %v2594_v13 = vmax.f32 %v621_v6, 0.0  ;;  %v598_v61 = vmax.f32 %v2533_v39, %v597_v54  ;;  %v692_v14 = vsel %vm653_vm10, %v691_v12, %v633_v8  ;;  %v721_v57 = vrot.slane %v2549_v7, 6 }
 0x196   :  { %v693_v42 = vrot.slane %v2589_v9, 6  ;;  %v719_v53 = vrot.slane %v2589_v9, 7  ;;  %v717_v15 = vrot.slane %v631_v10, 3  ;;  %v638_v18 = vmax.f32 %v622_v11, 0.0  ;;  %v940_v10 = vld [vmem:[%s2850_s5 + $0xb8] sm:$0xff] }
 0x197   :  { %v697_v19 = vrot.slane %v2594_v13, 4  ;;  %v599_v20 = vrot.slane %v598_v61, 1  ;;  %v723_v39 = vrot.slane %v2594_v13, 5  ;;  %v654_v25 = vsel %vm653_vm10, %v652_v62, %v624_v23  ;;  %v797_v23 = vld [vmem:[%s2849_s4 + $0x98] sm:$0xff] }
 0x198   :  { %v694_v22 = vsel %vm656_vm11, %v693_v42, %v692_v14  ;;  %v720_v24 = vsel %vm653_vm10, %v719_v53, %v2580_v16  ;;  %v718_v26 = vsel %vm665_vm14, %v717_v15, %v716_v3  ;;  %v699_v28 = vrot.slane %v638_v18, 3  ;;  %v800_v3 = vld [vmem:[%s2849_s4 + $0xb0] sm:$0xff] }
 0x199   :  { %v696_v27 = vsel %vm659_vm12, %v695_v29, %v694_v22  ;;  %v600_v31 = vmax.f32 %v598_v61, %v599_v20  ;;  %729 = vrot.lane.b32.xlu1 %v718_v26, %s2057_s3  ;;  %v722_v34 = vsel %vm656_vm11, %v721_v57, %v720_v24  ;;  %v725_v35 = vrot.slane %v638_v18, 4  ;;  %v939_v29 = vld [vmem:[%s2850_s5 + $0xb0] sm:$0xff]  ;;  %v802_v57 = vld [vmem:[%s2849_s4 + $0xc0] sm:$0xff]  ;;  %v942_v18 = vld [vmem:[%s2850_s5 + $0xc8] sm:$0xff] }
 0x19a   :  { %v698_v32 = vsel %vm662_vm13, %v697_v19, %v696_v27  ;;  %v655_v36 = vrot.slane %v2527_v30, 6  ;;  %v724_v1 = vsel %vm659_vm12, %v723_v39, %v722_v34  ;;  %v658_v41 = vrot.slane %v2530_v33, 5  ;;  %v935_v30 = vld [vmem:[%s2850_s5 + $0x90] sm:$0xff]  ;;  %v798_v33 = vld [vmem:[%s2849_s4 + $0xa0] sm:$0xff]  ;;  %v805_v24 = vld [vmem:[%s2849_s4 + $0xd8] sm:$0xff] }
 0x19b   :  { %v700_v0 = vsel %vm665_vm14, %v699_v28, %v698_v32  ;;  %v623_v40 = vadd.f32 %v2504_v46, %v600_v31  ;;  %v667_v45 = vrot.slane %v633_v8, 7  ;;  %v726_v47 = vsel %vm662_vm13, %v725_v35, %v724_v1  ;;  %v804_v22 = vld [vmem:[%s2849_s4 + $0xd0] sm:$0xff]  ;;  %v806_v28 = vld [vmem:[%s2849_s4 + $0xe0] sm:$0xff]  ;;  %v807_v31 = vld [vmem:[%s2849_s4 + $0xe8] sm:$0xff] }
 0x19c   :  { %703 = vrot.lane.b32.xlu0 %v700_v0, %s2054_s19  ;;  %v657_v48 = vsel %vm656_vm11, %v655_v36, %v654_v25  ;;  %v661_v46 = vrot.slane %v2522_v21, 4  ;;  %v664_v52 = vrot.slane %v2546_v5, 3  ;;  %v1922_v54 = vpack.c.bf16 %v797_v23, %v796_v60  ;;  %v938_v21 = vld [vmem:[%s2850_s5 + $0xa8] sm:$0xff]  ;;  %v943_v39 = vld [vmem:[%s2850_s5 + $0xd0] sm:$0xff]  ;;  %v944_v25 = vld [vmem:[%s2850_s5 + $0xd8] sm:$0xff] }
 0x19d   :  { %v639_v38 = vmax.f32 %v623_v40, 0.0  ;;  %v660_v17 = vsel %vm659_vm12, %v658_v41, %v657_v48  ;;  %v632_v58 = vmax.f32 %v2566_v44, 0.0  ;;  %v1967_v62 = vpack.c.bf16 %v936_v43, %v935_v30  ;;  %v801_v44 = vld [vmem:[%s2849_s4 + $0xb8] sm:$0xff]  ;;  %v945_v32 = vld [vmem:[%s2850_s5 + $0xe0] sm:$0xff]  ;;  %v946_v34 = vld [vmem:[%s2850_s5 + $0xe8] sm:$0xff] }
 0x19e   :  { %v663_v59 = vsel %vm662_vm13, %v661_v46, %v660_v17  ;;  %1923 = vmatpush1.bf16.msra.mxu0 %v1922_v54  ;;  %v1925_v5 = vpack.c.bf16 %v799_v51, %v798_v33  ;;  %v1970_v2 = vpack.c.bf16 %v938_v21, %v937_v56  ;;  %v669_v6 = vrot.slane %v2580_v16, 6 }
 0x19f   :  { %v727_v37 = vrot.slane %v639_v38, 3  ;;  %v2652_v63 = vsel %vm665_vm14, %v664_v52, %v663_v59  ;;  %1968 = vmatpush1.bf16.msra.mxu1 %v1967_v62  ;;  %1924 = vmatprep.subr.bf16.mxu0 %v2055_v55  ;;  %v668_v4 = vsel %vm653_vm10, %v667_v45, %v632_v58  ;;  %v671_v8 = vrot.slane %v2589_v9, 5 }
 0x1a0   :  { %1969 = vmatprep.subr.bf16.mxu1 %v2055_v55  ;;  %v670_v11 = vsel %vm656_vm11, %v669_v6, %v668_v4  ;;  %v673_v16 = vrot.slane %v2549_v7, 4  ;;  %v1928_v9 = vpack.c.bf16 %v801_v44, %v800_v3  ;;  %v675_v14 = vrot.slane %v2594_v13, 3  ;;  %v803_v7 = vld [vmem:[%s2849_s4 + $0xc8] sm:$0xff]  ;;  %v941_v13 = vld [vmem:[%s2850_s5 + $0xc0] sm:$0xff] }
 0x1a1   :  { %v728_v12 = vsel %vm665_vm14, %v727_v37, %v726_v47  ;;  %v672_v61 = vsel %vm659_vm12, %v671_v8, %v670_v11  ;;  %v1973_v42 = vpack.c.bf16 %v940_v10, %v939_v29  ;;  %v1931_v19 = vpack.c.bf16 %v803_v7, %v802_v57  ;;  %v1144_v3 = vld [vmem:[%s2852_s7] sm:$0xff]  ;;  %v1145_v44 = vld [vmem:[%s2852_s7 + $0x8] sm:$0xff] }
 0x1a2   :  { %731 = vrot.lane.b32.xlu1 %v728_v12, %s2057_s3  ;;  %1926 = vmatpush1.bf16.msra.mxu0 %v1925_v5  ;;  %v674_v53 = vsel %vm662_vm13, %v673_v16, %v672_v61  ;;  %v1976_v20 = vpack.c.bf16 %v942_v18, %v941_v13  ;;  %v1934_v26 = vpack.c.bf16 %v805_v24, %v804_v22  ;;  %vm1379_vm9 = vcmask 130048  }
 0x1a3   :  { %1971 = vmatpush1.bf16.msra.mxu1 %v1970_v2  ;;  %1927 = vmatprep.subr.bf16.mxu0 %v2055_v55  ;;  %v676_v15 = vsel %vm665_vm14, %v675_v14, %v674_v53  ;;  %v1979_v27 = vpack.c.bf16 %v944_v25, %v943_v39  ;;  %v1937_v35 = vpack.c.bf16 %v807_v31, %v806_v28  ;;  %vm1565_vm12 = vcmask 80896  }
 0x1a4   :  { %1972 = vmatprep.subr.bf16.mxu1 %v2055_v55  ;;  %v1982_v36 = vpack.c.bf16 %v946_v34, %v945_v32  ;;  %v1985_v4 = vpack.c.bf16 %v1145_v44, %v1144_v3  ;;  %vm1643_vm13 = vcmask 25600  }
 0x1a6   :  { %1929 = vmatpush1.bf16.msra.mxu0 %v1928_v9 }
 0x1a7   :  { %1974 = vmatpush1.bf16.msra.mxu1 %v1973_v42  ;;  %1930 = vmatprep.subr.bf16.mxu0 %v2055_v55 }
 0x1a8   :  { %1975 = vmatprep.subr.bf16.mxu1 %v2055_v55 }
 0x1aa   :  { %1932 = vmatpush1.bf16.msra.mxu0 %v1931_v19 }
 0x1ab   :  { %1977 = vmatpush1.bf16.msra.mxu1 %v1976_v20  ;;  %1933 = vmatprep.subr.bf16.mxu0 %v2055_v55 }
 0x1ac   :  { %1978 = vmatprep.subr.bf16.mxu1 %v2055_v55 }
 0x1ae   :  { %1935 = vmatpush1.bf16.msra.mxu0 %v1934_v26 }
 0x1af   :  { %1980 = vmatpush1.bf16.msra.mxu1 %v1979_v27  ;;  %1936 = vmatprep.subr.bf16.mxu0 %v2055_v55 }
 0x1b0   :  { %1981 = vmatprep.subr.bf16.mxu1 %v2055_v55 }
 0x1b2   :  { %1938 = vmatpush1.bf16.msra.mxu0 %v1937_v35 }
 0x1b3   :  { %1983 = vmatpush1.bf16.msra.mxu1 %v1982_v36  ;;  %1984 = vmatprep.subr.bf16.mxu0 %v2055_v55 }
 0x1b4   :  { %1990 = vmatprep.subr.bf16.mxu1 %v2055_v55 }
 0x201   :  { %v702_v60 = vpop.permute.xlu0 %701 }
 0x202   :  { %v735_v23 = vsel %vm176_vm7, %v2652_v63, %v702_v60 }
 0x20b   :  { %v730_v0 = vpop.permute.xlu1 %729 }
 0x20c   :  { %v738_v40 = vsel %vm737_vm15, %v702_v60, %v730_v0 }
 0x20d   :  { %v744_v1 = vcombine.low %v735_v23, %v738_v40  ;;  %v745_v45 = vcombine.high %v735_v23, %v738_v40 }
 0x20e   :  { %v704_v30 = vpop.permute.xlu0 %703 }
 0x20f   :  { %v752_v41 = vrot.slane %v744_v1, %v2483_v50  ;;  %v736_v43 = vsel %vm176_vm7, %v676_v15, %v704_v30  ;;  %v759_v38 = vrot.slane %v745_v45, %v2483_v50  ;;  %vm1992_vm7 = vmpackc.low %vm138_vm3, %vm2061_vm6 }
 0x211   :  { %v760_v47 = vcombine.high %v752_v41, %v752_v41 }
 0x213   :  { %v808_v17 = vcombine.low %v752_v41, %v760_v47 }
 0x214   :  { %v732_v48 = vpop.permute.xlu1 %731 }
 0x215   :  { %v739_v46 = vsel %vm737_vm15, %v704_v30, %v732_v48  ;;  %v816_v58 = vrot.slane %v808_v17, %v2483_v50  ;;  %v1674_v17 = vld [vmem:[%s2851_s6] ss:$0 sm:$0xff] }
 0x216   :  { %v761_v33 = vcombine.low %v736_v43, %v739_v46  ;;  %v762_v51 = vcombine.high %v736_v43, %v739_v46  ;;  %v1146_v46 = vld [vmem:[%s2852_s7 + $0x10] sm:$0xff] }
 0x218   :  { %v769_v52 = vrot.slane %v761_v33, %v2483_v50  ;;  %v776_v54 = vrot.slane %v762_v51, %v2483_v50  ;;  %v1147_v33 = vld [vmem:[%s2852_s7 + $0x18] sm:$0xff] }
 0x21a   :  { %v777_v56 = vcombine.high %v769_v52, %v769_v52  ;;  %v809_v21 = vcombine.low %v759_v38, %v769_v52  ;;  %v1988_v52 = vpack.c.bf16 %v1147_v33, %v1146_v46  ;;  %v1271_v46 = vsub.s32 1, %v2480_v49 }
 0x21c   :  { %v823_v59 = vrot.slane %v809_v21, %v2483_v50  ;;  %v826_v62 = vcombine.low %v777_v56, %v776_v54 }
 0x21e   :  { %v824_v37 = vcombine.low %v816_v58, %v823_v59  ;;  %v833_v63 = vrot.slane %v826_v62, %v2483_v50  ;;  %v825_v5 = vcombine.high %v816_v58, %v823_v59 }
 0x220   :  { %1670 = vmatprep.mubr.msk.f32.mxu0 %vm837_vm0, %v825_v5  ;;  %1672 = vmatprep.mubr.msk.f32.mxu1 %vm837_vm0, %v825_v5  ;;  %v834_v2 = vcombine.high %v833_v63, %v833_v63 }
 0x221   :  { %907 = vmatmul.mubr.f32.vlgmr.msra.gmra.mrb[4].mxu0 %v824_v37  ;;  %1012 = vmatmul.mubr.f32.vlgmr.msra.gmra.mrb[4].mxu1 %v824_v37 }
 0x222   :  { %1671 = vmatprep.mubr.msk.f32.mxu0 %vm837_vm0, %v834_v2  ;;  %1673 = vmatprep.mubr.msk.f32.mxu1 %vm837_vm0, %v834_v2 }
 0x223   :  { %1986 = vmatpush3.bf16.msra.mxu0 %v1985_v4 }
 0x224   :  { %1987 = vmatprep.subr.bf16.mxu0 %v2055_v55 }
 0x225   :  { %912 = vmatmul.mubr.f32.gmra.mrb[6].mxu0 %v833_v63  ;;  %1017 = vmatmul.mubr.f32.gmra.mrb[6].mxu1 %v833_v63 }
 0x227   :  { %1989 = vmatpush3.bf16.msra.mxu0 %v1988_v52 }
 0x2f4   :  { %v908_v6 = vpop.f32.mrb[4].mxu0  ;;  %v1013_v8 = vpop.f32.mrb[4].mxu1 }
 0x2f5   :  { %v1022_v12 = vmax.f32 %v908_v6, %v1013_v8  ;;  %v910_v29 = vpop.f32.mrb[5].mxu0  ;;  %v1015_v10 = vpop.f32.mrb[5].mxu1 }
 0x2f7   :  { %v1026_v11 = vcombine.high %v1022_v12, %v1022_v12  ;;  %v1033_v16 = vrot.slane %v1022_v12, %v2483_v50 }
 0x2f8   :  { %v913_v9 = vpop.f32.mrb[6].mxu0  ;;  %v1018_v61 = vpop.f32.mrb[6].mxu1 }
 0x2f9   :  { %v1040_v14 = vrot.slane %v1026_v11, %v2483_v50  ;;  %v1041_v42 = vcombine.high %v1033_v16, %v1033_v16  ;;  %v1058_v53 = vsel %vm1057_vm1, %v1033_v16, -inf  ;;  %v1023_v57 = vmax.f32 %v913_v9, %v1018_v61  ;;  %v915_v7 = vpop.f32.mrb[7].mxu0  ;;  %v1020_v15 = vpop.f32.mrb[7].mxu1  ;;  %v1148_v9 = vld [vmem:[%s2852_s7 + $0x20] sm:$0xf]  ;;  %s2060_s7 = smov 18  }
 0x2fa   :  { %v1059_v13 = vrot.slane %v1058_v53, 4 }
 0x2fb   :  { %v1042_v18 = vcombine.high %v1040_v14, %v1040_v14  ;;  %v1065_v19 = vsel %vm1057_vm1, %v1041_v42, -inf  ;;  %v1072_v20 = vsel %vm1057_vm1, %v1040_v14, -inf  ;;  %v1049_v22 = vrot.slane %v1023_v57, %v2483_v50 }
 0x2fc   :  { %v1060_v24 = vmax.f32 %v1058_v53, %v1059_v13  ;;  %v1066_v39 = vrot.slane %v1065_v19, 4  ;;  %v1073_v25 = vrot.slane %v1072_v20, 4  ;;  %v2058_v42 = vmov 0.0  }
 0x2fd   :  { %v1079_v26 = vsel %vm1057_vm1, %v1042_v18, -inf  ;;  %v1050_v27 = vcombine.high %v1049_v22, %v1049_v22  ;;  %v1086_v28 = vsel %vm1057_vm1, %v1049_v22, -inf  ;;  %1813 = vmatprep.subr.mxu0 %v2058_v42  ;;  %1815 = vmatprep.mubr.msk.f32.mxu0 %vm2059_vm2, %v2058_v42 }
 0x2fe   :  { %v1061_v31 = vrot.slane %v1060_v24, 2  ;;  %v1067_v32 = vmax.f32 %v1065_v19, %v1066_v39  ;;  %v1074_v34 = vmax.f32 %v1072_v20, %v1073_v25  ;;  %v1080_v35 = vrot.slane %v1079_v26, 4  ;;  %1814 = vmatpush3.msk.msra.mxu0 %vm138_vm3, %v1148_v9  ;;  %1822 = vmatprep.mubr.msk.f32.mxu1 %vm2059_vm2, %v2058_v42  ;;  %v1471_v9 = vld [vmem:[%s2858_s13] sm:$0xff] }
 0x2ff   :  { %v1087_v36 = vrot.slane %v1086_v28, 4  ;;  %v1093_v60 = vsel %vm1057_vm1, %v1050_v27, -inf  ;;  %1997 = vmatprep.subr.bf16.mxu0 %v2055_v55  ;;  %vm1281_vm3 = vcmask 48128  }
 0x300   :  { %v1062_v23 = vmax.f32 %v1060_v24, %v1061_v31  ;;  %v1068_v0 = vrot.slane %v1067_v32, 2  ;;  %v1075_v40 = vrot.slane %v1074_v34, 2  ;;  %v1081_v1 = vmax.f32 %v1079_v26, %v1080_v35 }
 0x301   :  { %v1088_v41 = vmax.f32 %v1086_v28, %v1087_v36  ;;  %v1094_v30 = vrot.slane %v1093_v60, 4  ;;  %v1283_v36 = vld [vmem:[%s2854_s9] sm:$0xff] }
 0x302   :  { %v1063_v43 = vrot.slane %v1062_v23, 1  ;;  %v1069_v45 = vmax.f32 %v1067_v32, %v1068_v0  ;;  %v1076_v47 = vmax.f32 %v1074_v34, %v1075_v40  ;;  %v1082_v48 = vrot.slane %v1081_v1, 2  ;;  %v1677_v40 = vld [vmem:[%s2853_s8] ss:$0 sm:$0xff]  ;;  %s2062_s8 = smov 6  }
 0x303   :  { %v1089_v51 = vrot.slane %v1088_v41, 2  ;;  %v1095_v38 = vmax.f32 %v1093_v60, %v1094_v30  ;;  %v1284_v60 = vld [vmem:[%s2854_s9 + $0x8] sm:$0xf] }
 0x304   :  { %v1064_v54 = vmax.f32 %v1062_v23, %v1063_v43  ;;  %v1083_v56 = vmax.f32 %v1081_v1, %v1082_v48  ;;  %v1070_v21 = vrot.slane %v1069_v45, 1  ;;  %v1077_v58 = vrot.slane %v1076_v47, 1 }
 0x305   :  { %v1090_v59 = vmax.f32 %v1088_v41, %v1089_v51  ;;  %v1096_v62 = vrot.slane %v1095_v38, 2  ;;  %v1991_v23 = vpack.c.bf16 %v1284_v60, %v1283_v36  ;;  %v1261_v48 = vsub.s32 0, %v2480_v49  ;;  %v1370_v49 = vld [vmem:[%s2856_s11] sm:$0xff] }
 0x306   :  { %v1071_v37 = vmax.f32 %v1069_v45, %v1070_v21  ;;  %v1078_v63 = vmax.f32 %v1076_v47, %v1077_v58  ;;  %v1107_v5 = vadd.f32 %v1674_v17, %v1064_v54  ;;  %v1084_v2 = vrot.slane %v1083_v56, 1  ;;  %v1371_v58 = vld [vmem:[%s2856_s11 + $0x8] sm:$0xff] }
 0x307   :  { %v1091_v3 = vrot.slane %v1090_v59, 1  ;;  %v1097_v44 = vmax.f32 %v1095_v38, %v1096_v62  ;;  %1993 = vmatpush3.bf16.msk.msra.mxu1 %vm1992_vm7, %v1991_v23  ;;  %v1678_v62 = vld [vmem:[%s2855_s10] ss:$0 sm:$0xff]  ;;  %s2063_s10 = smov 112  }
 0x308   :  { %v1108_v4 = vadd.f32 %v1674_v17, %v1071_v37  ;;  %v1109_v6 = vadd.f32 %v1674_v17, %v1078_v63  ;;  %v1085_v8 = vmax.f32 %v1083_v56, %v1084_v2  ;;  %v1113_v7 = vmax.f32 %v1107_v5, 0.0  ;;  %1994 = vmatprep.subr.bf16.mxu1 %v2055_v55 }
 0x309   :  { %v1092_v12 = vmax.f32 %v1090_v59, %v1091_v3  ;;  %v1098_v29 = vrot.slane %v1097_v44, 1  ;;  %v1995_v59 = vpack.c.bf16 %v1371_v58, %v1370_v49  ;;  %v1681_v3 = vld [vmem:[%s2857_s12] ss:$0 sm:$0xff] }
 0x30a   :  { %v1114_v10 = vmax.f32 %v1108_v4, 0.0  ;;  %v1115_v11 = vmax.f32 %v1109_v6, 0.0  ;;  %v1110_v16 = vadd.f32 %v1674_v17, %v1085_v8 }
 0x30b   :  { %v1099_v61 = vmax.f32 %v1097_v44, %v1098_v29  ;;  %v1111_v14 = vadd.f32 %v1674_v17, %v1092_v12 }
 0x30c   :  { %v1123_v53 = vrot.slane %v1114_v10, 7  ;;  %v1131_v57 = vrot.slane %v1115_v11, 7  ;;  %v1116_v24 = vmax.f32 %v1110_v16, 0.0 }
 0x30d   :  { %v1112_v15 = vadd.f32 %v1674_v17, %v1099_v61  ;;  %v1117_v13 = vmax.f32 %v1111_v14, 0.0  ;;  %v1472_v61 = vld [vmem:[%s2858_s13 + $0x8] sm:$0xff] }
 0x30e   :  { %v1132_v18 = vsel %vm653_vm10, %v1131_v57, %v1114_v10  ;;  %v1124_v19 = vsel %vm653_vm10, %v1123_v53, %v1113_v7  ;;  %v1998_v14 = vpack.c.bf16 %v1472_v61, %v1471_v9 }
 0x30f   :  { %1135 = vrot.lane.b32.xlu0 %v1132_v18, %s2060_s7  ;;  %v1118_v20 = vmax.f32 %v1112_v15, 0.0  ;;  %v1125_v22 = vrot.slane %v1117_v13, 7  ;;  %v1556_v15 = vld [vmem:[%s2860_s15] sm:$0xff] }
 0x311   :  { %v1133_v39 = vrot.slane %v1118_v20, 7  ;;  %v1126_v25 = vsel %vm653_vm10, %v1125_v22, %v1116_v24 }
 0x313   :  { %v1134_v26 = vsel %vm653_vm10, %v1133_v39, %v1117_v13  ;;  %v1557_v13 = vld [vmem:[%s2860_s15 + $0x8] sm:$0x3]  ;;  %s2065_s15 = smov [#allocation2]  }
 0x314   :  { %1137 = vrot.lane.b32.xlu1 %v1134_v26, %s2060_s7  ;;  %v2001_v18 = vpack.c.bf16 %v1557_v13, %v1556_v15  ;;  %s1651_s29 = sshll.u32 %s2065_s15, 4  ;;  %s1652_s29 = int_to_ptr.vmem [resolvable:$true] %s1651_s29 }
 0x315   :  { %s2027_s19 = scalar_lea.vmem %s1652_s29, 32  ;;  %p2032_p1 = scmp.lt.s32.totalorder %s1652_s29, %s1652_s29 }
 0x316   :  { %p2028_p0 = scmp.ne.s32.totalorder %s1652_s29, %s2027_s19  ;;  %p2033_p2 = scmp.lt.s32.totalorder %s2027_s19, %s2027_s19 }
 0x318   :  { %p2034_p3 = por %p2033_p2, %p2032_p1 }
 0x31a   :  { %p2035_p4 = pnand %p2034_p3, %p2028_p0 }
 0x381   :  { %v1136_v27 = vpop.permute.xlu0 %1135 }
 0x382   :  { %v1142_v31 = vsel %vm1141_vm4, %v1124_v19, %v1136_v27  ;;  %v1684_v19 = vld [vmem:[%s2859_s14] ss:$0 sm:$0xff] }
 0x386   :  { %v1138_v28 = vpop.permute.xlu1 %1137 }
 0x387   :  { %v1143_v32 = vsel %vm1141_vm4, %v1126_v25, %v1138_v28  ;;  %v1686_v25 = vld [vmem:[%s2861_s16] ss:$0 sm:$0xff] }
 0x388   :  { %v1151_v34 = vcombine.low %v1142_v31, %v1143_v32 }
 0x38a   :  { %v1158_v35 = vrot.slane %v1151_v34, %v2483_v50 }
 0x38c   :  { %1816 = vmatmul.mubr.msk.f32.vlgmr.msra.gmra.mrb[8].mxu0 %vm1159_vm5, %v1158_v35 }
 0x38d   :  { %1836 = vmatprep.mubr.msk.f32.mxu0 %vm2059_vm2, %v2058_v42  ;;  %1999 = vmatpush3.bf16.msra.mxu0 %v1998_v14 }
 0x45f   :  { %v1231_v0 = vpop.f32.mrb[8].mxu0 }
 0x460   :  { %v1242_v1 = vrot.slane %v1231_v0, %v2483_v50  ;;  %v1817_v41 = vpop.f32.mrb[9].mxu0 }
 0x462   :  { %v1243_v30 = vcombine.high %v1242_v1, %v1242_v1  ;;  %v1253_v43 = vadd.f32 %v1677_v40, %v1242_v1 }
 0x464   :  { %v1254_v45 = vadd.f32 %v1677_v40, %v1243_v30  ;;  %v1255_v47 = vmax.f32 %v1253_v43, 0.0 }
 0x466   :  { %v1256_v33 = vmax.f32 %v1254_v45, 0.0  ;;  %v1262_v51 = vrot.slane %v1255_v47, %v1261_v48  ;;  %v1272_v17 = vrot.slane %v1255_v47, %v1271_v46 }
 0x468   :  { %v1266_v38 = vrot.slane %v1256_v33, %v1261_v48  ;;  %v1276_v52 = vrot.slane %v1256_v33, %v1271_v46 }
 0x46a   :  { %v1277_v54 = vsel %vm653_vm10, %v1276_v52, %v1272_v17  ;;  %v1267_v56 = vsel %vm653_vm10, %v1266_v38, %v1262_v51  ;;  %vm1569_vm10 = vcmask 1041408  }
 0x46b   :  { %1278 = vrot.lane.b32.xlu0 %v1277_v54, %s2062_s8  ;;  %vm2002_vm11 = vmpackc.low %vm1569_vm10, %vm2061_vm6 }
 0x4dd   :  { %v1279_v50 = vpop.permute.xlu0 %1278 }
 0x4de   :  { %v1282_v21 = vsel %vm1281_vm3, %v1267_v56, %v1279_v50 }
 0x4df   :  { %1823 = vmatmul.mubr.msk.f32.vlgmr.msra.gmra.mrb[8].mxu1 %vm1292_vm8, %v1282_v21 }
 0x4e0   :  { %1829 = vmatprep.mubr.msk.f32.mxu1 %vm2059_vm2, %v2058_v42  ;;  %1996 = vmatpush3.bf16.msra.mxu1 %v1995_v59 }
 0x4e1   :  { %2000 = vmatprep.subr.bf16.mxu1 %v2055_v55 }
 0x5b2   :  { %v1365_v37 = vpop.f32.mrb[8].mxu1 }
 0x5b3   :  { %v1366_v63 = vadd.f32 %v1678_v62, %v1365_v37  ;;  %v1824_v5 = vpop.f32.mrb[9].mxu1 }
 0x5b5   :  { %v1369_v2 = vmax.f32 %v1366_v63, 0.0 }
 0x5b7   :  { %1830 = vmatmul.mubr.msk.f32.vlgmr.msra.gmra.mrb[10].mxu1 %vm1379_vm9, %v1369_v2 }
 0x5b8   :  { %1843 = vmatprep.mubr.msk.f32.mxu1 %vm2059_vm2, %v2058_v42  ;;  %2003 = vmatpush3.bf16.msk.msra.mxu1 %vm2002_vm11, %v2001_v18 }
 0x68a   :  { %v1449_v44 = vpop.f32.mrb[10].mxu1 }
 0x68b   :  { %v1450_v55 = vadd.f32 %v1681_v3, %v1449_v44  ;;  %v1831_v4 = vpop.f32.mrb[11].mxu1 }
 0x68d   :  { %2019 = vtanh.f32 %v1450_v55  ;;  %v1683_v8 = vmul.f32 -1.442695, %v1450_v55 }
 0x68f   :  { %2021 = vpow2.f32 %v1683_v8 }
 0x697   :  { %v2020_v6 = vpop.eup %2019 }
 0x698   :  { %1461 = vrot.lane.b32.xlu1 %v2020_v6, %s2063_s10 }
 0x699   :  { %v2022_v12 = vpop.eup %2021 }
 0x69a   :  { %v1456_v29 = vadd.f32 1.0, %v2022_v12 }
 0x69c   :  { %2023 = vrcp.f32 %v1456_v29 }
 0x6a6   :  { %v2024_v10 = vpop.eup %2023 }
 0x70a   :  { %v1462_v11 = vpop.permute.xlu1 %1461 }
 0x70b   :  { %v1464_v16 = vmul.f32 %v2024_v10, %v1462_v11 }
 0x70d   :  { %2025 = vtanh.f32 %v1464_v16 }
 0x717   :  { %v2026_v42 = vpop.eup %2025 }
 0x718   :  { %1467 = vrot.lane.b32.xlu0 %v2026_v42, %s2057_s3 }
 0x78a   :  { %v1468_v53 = vpop.permute.xlu0 %1467 }
 0x78b   :  { %v1470_v57 = vmul.f32 %v2024_v10, %v1468_v53 }
 0x78d   :  { %1481 = vrot.lane.b32.xlu1 %v1470_v57, %s2064_s26 }
 0x7ff   :  { %v1482_v7 = vpop.permute.xlu1 %1481 }
 0x800   :  { %1837 = vmatmul.mubr.msk.f32.vlgmr.msra.gmra.mrb[10].mxu0 %vm1379_vm9, %v1482_v7 }
 0x8d3   :  { %v1551_v20 = vpop.f32.mrb[10].mxu0 }
 0x8d4   :  { %v1552_v22 = vadd.f32 %v1684_v19, %v1551_v20  ;;  %v1838_v24 = vpop.f32.mrb[11].mxu0 }
 0x8d6   :  { %v1555_v39 = vmax.f32 %v1552_v22, 0.0 }
 0x8d8   :  { %1844 = vmatmul.mubr.msk.f32.vlgmr.msra.gmra.mrb[12].mxu1 %vm1565_vm12, %v1555_v39 }
 0x9ab   :  { %v1639_v26 = vpop.f32.mrb[12].mxu1 }
 0x9ac   :  { %v1640_v27 = vadd.f32 %v1686_v25, %v1639_v26  ;;  %v1845_v28 = vpop.f32.mrb[13].mxu1 }
 0x9ae   :  { %1644 = vst.msk [vmem:[#allocation2] sm:$0x3] %vm1643_vm13, %v1640_v27 }
 0x9af   :  { %2038 = shalt.err (!%p2035_p4)
}
 0x9b0   :  { %s2039_s0 = scalar_lea.hbm %s2862_s17, 32 }
 0x9b1   :  { %p2040_p5 = scmp.ne.s32.totalorder %s2862_s17, %s2039_s0  ;;  %p2043_p6 = scmp.lt.u32.totalorder %s2039_s0, %s2862_s17 }
 0x9b3   :  { %p2045_p7 = pnand %p2043_p6, %p2040_p5 }
 0x9b5   :  { %2048 = shalt.err (!%p2045_p7)
}
 0x9b6   :  { %1654 = dma.vmem_to_hbm [thread:$0]  %s1652_s29, 32, %s2862_s17, [#allocation3]  }
 0x9b7   :  { %2049 = dma.done.wait [#allocation3], 32  }
 0x9b8   :  { %2050 = vsyncadd [#allocation3], 4294967264 }
 0x9b9   :  { %1658 = vsyncpa [#allocation3], 1 }

</bundles_post_ra>
